<compile_context>
chip_gen: v6e
topology: v6e:2x2x1
jax: 0.10.0
libtpu: 0.0.40
codegen_flags: <defaults>
</compile_context>

<pallas_src>
import functools

import jax
import jax.numpy as jnp
from jax.experimental import pallas as pl
from jax.experimental.pallas import tpu as pltpu

_LANE = 128
_SUBLANE = 8
_MAX_TILE_ROWS = 1024            # per-step VMEM stays well under 32 MiB even at CK=2048
_VMEM_LIMIT = 32 * 1024 * 1024   # conservative for v7x (64 MiB physical / 32 MiB scoped)
_BN_EPS = 1e-5


def _round_up(x, m):
    return (x + m - 1) // m * m


# ----------------------------------------------------------------------------
# Kernel 1: row-tiled fused matmul + bias (+ ReLU) (+ per-tile BN partial stats)
# ----------------------------------------------------------------------------
def _mm_bias_act_kernel(x_ref, w_ref, b_ref, y_ref, *, apply_relu):
    acc = jnp.dot(x_ref[...], w_ref[...], preferred_element_type=jnp.float32)
    acc = acc + b_ref[...]
    if apply_relu:
        acc = jnp.maximum(acc, 0.0)
    y_ref[...] = acc


def _mm_bias_act_stats_kernel(x_ref, w_ref, b_ref, y_ref, st_ref, *,
                              apply_relu, rows_valid, tile_rows):
    i = pl.program_id(0)
    acc = jnp.dot(x_ref[...], w_ref[...], preferred_element_type=jnp.float32)
    acc = acc + b_ref[...]
    if apply_relu:
        acc = jnp.maximum(acc, 0.0)
    y_ref[...] = acc
    # Per-tile partial BatchNorm statistics over valid (non-padded) rows only.
    row_ids = i * tile_rows + jax.lax.broadcasted_iota(jnp.int32, (tile_rows, 1), 0)
    mask = (row_ids < rows_valid).astype(jnp.float32)
    ym = acc * mask
    s = jnp.sum(ym, axis=0, keepdims=True)
    ss = jnp.sum(ym * ym, axis=0, keepdims=True)
    pad = jnp.zeros((_SUBLANE - 2, ym.shape[1]), jnp.float32)
    st_ref[...] = jnp.concatenate([s, ss, pad], axis=0)


def _fused_matmul(patches, w_mat, bias, *, apply_relu, compute_stats, rows_valid):
    """patches [R, CK] @ w_mat [CK, Co] + bias, optional ReLU and BN partial stats.

    Returns (y [Rp, Cop] f32, sum [Cop] | None, sumsq [Cop] | None, Cop, Rp).
    """
    R, CK = patches.shape
    Co = w_mat.shape[1]
    Cop = _round_up(Co, _LANE)                       # lane-dense output channels
    TM = min(_MAX_TILE_ROWS, _round_up(max(R, _SUBLANE), _SUBLANE))
    Rp = _round_up(R, TM)
    G = Rp // TM

    x = jnp.pad(patches.astype(jnp.bfloat16), ((0, Rp - R), (0, 0)))
    w = jnp.pad(w_mat.astype(jnp.bfloat16), ((0, 0), (0, Cop - Co)))
    b = jnp.pad(bias.astype(jnp.float32), (0, Cop - Co)).reshape(1, Cop)

    x_spec = pl.BlockSpec((TM, CK), lambda i: (i, 0))
    w_spec = pl.BlockSpec((CK, Cop), lambda i: (0, 0))   # weights stay resident
    b_spec = pl.BlockSpec((1, Cop), lambda i: (0, 0))
    y_spec = pl.BlockSpec((TM, Cop), lambda i: (i, 0))

    cost = pl.CostEstimate(
        flops=int(2 * Rp * CK * Cop), transcendentals=0,
        bytes_accessed=int(Rp * CK * 2 + CK * Cop * 2 + Rp * Cop * 4))
    cparams = pltpu.CompilerParams(dimension_semantics=("parallel",),
                                   vmem_limit_bytes=_VMEM_LIMIT)

    if compute_stats:
        kern = functools.partial(_mm_bias_act_stats_kernel, apply_relu=apply_relu,
                                 rows_valid=rows_valid, tile_rows=TM)
        y, stats = pl.pallas_call(
            kern, grid=(G,),
            in_specs=[x_spec, w_spec, b_spec],
            out_specs=[y_spec, pl.BlockSpec((_SUBLANE, Cop), lambda i: (i, 0))],
            out_shape=[jax.ShapeDtypeStruct((Rp, Cop), jnp.float32),
                       jax.ShapeDtypeStruct((G * _SUBLANE, Cop), jnp.float32)],
            compiler_params=cparams, cost_estimate=cost,
        )(x, w, b)
        ps = stats.reshape(G, _SUBLANE, Cop)
        return y, jnp.sum(ps[:, 0, :], axis=0), jnp.sum(ps[:, 1, :], axis=0), Cop, Rp

    kern = functools.partial(_mm_bias_act_kernel, apply_relu=apply_relu)
    y = pl.pallas_call(
        kern, grid=(G,),
        in_specs=[x_spec, w_spec, b_spec],
        out_specs=y_spec,
        out_shape=jax.ShapeDtypeStruct((Rp, Cop), jnp.float32),
        compiler_params=cparams, cost_estimate=cost,
    )(x, w, b)
    return y, None, None, Cop, Rp


# ----------------------------------------------------------------------------
# Kernel 2: tiled per-channel scale/shift (BatchNorm application, pass 2).
# ----------------------------------------------------------------------------
def _scale_shift_kernel(y_ref, sc_ref, sh_ref, o_ref):
    o_ref[...] = y_ref[...] * sc_ref[...] + sh_ref[...]


def _scale_shift(y, scale, shift):
    Rp, C = y.shape
    TM = min(_MAX_TILE_ROWS, Rp)
    assert Rp % TM == 0
    G = Rp // TM
    sc = scale.reshape(1, C).astype(jnp.float32)
    sh = shift.reshape(1, C).astype(jnp.float32)
    return pl.pallas_call(
        _scale_shift_kernel, grid=(G,),
        in_specs=[pl.BlockSpec((TM, C), lambda i: (i, 0)),
                  pl.BlockSpec((1, C), lambda i: (0, 0)),
                  pl.BlockSpec((1, C), lambda i: (0, 0))],
        out_specs=pl.BlockSpec((TM, C), lambda i: (i, 0)),
        out_shape=jax.ShapeDtypeStruct((Rp, C), jnp.float32),
        compiler_params=pltpu.CompilerParams(dimension_semantics=("parallel",),
                                             vmem_limit_bytes=_VMEM_LIMIT),
        cost_estimate=pl.CostEstimate(flops=int(2 * Rp * C), transcendentals=0,
                                      bytes_accessed=int(2 * Rp * C * 4)),
    )(y, sc, sh)


# ----------------------------------------------------------------------------
# Layers (channels-last [N, L, C] in / out).
# ----------------------------------------------------------------------------
def encoder_conv_layer(x_cl, w, b, gamma, beta, *, stride, padding):
    """Conv1d -> ReLU -> BatchNorm1d (training-mode batch statistics).

    x_cl: [N, L, Ci] channels-last.  w: [Co, Ci, K] (PyTorch Conv1d layout).
    """
    N, L, Ci = x_cl.shape
    Co, _, K = w.shape
    L_out = (L + 2 * padding - K) // stride + 1

    # im2col over the time axis only (channels-last -> no transposes).
    # TODO(synk): fuse the im2col window extraction into the matmul kernel
    #             (overlapping-window DMA) to drop the K/stride-duplicated
    #             patches array from HBM entirely.
    x_pad = jnp.pad(x_cl, ((0, 0), (padding, padding), (0, 0)))
    idx = jnp.arange(L_out)[:, None] * stride + jnp.arange(K)[None, :]
    patches = x_pad[:, idx, :].reshape(N * L_out, K * Ci)
    w_mat = jnp.transpose(w, (2, 1, 0)).reshape(K * Ci, Co)   # [K*Ci, Co]

    R = N * L_out
    y, s, ss, Cop, _ = _fused_matmul(patches, w_mat, b, apply_relu=True,
                                     compute_stats=True, rows_valid=R)
    mean = s / R
    var = jnp.maximum(ss / R - mean * mean, 0.0)              # biased variance
    gamma_p = jnp.pad(gamma.astype(jnp.float32), (0, Cop - Co))
    beta_p = jnp.pad(beta.astype(jnp.float32), (0, Cop - Co))
    scale = gamma_p * jax.lax.rsqrt(var + _BN_EPS)
    shift = beta_p - mean * scale
    y = _scale_shift(y, scale, shift)
    return y[:R, :Co].reshape(N, L_out, Co)


def decoder_convt_layer(x_cl, w, b, gamma, beta, *, stride, padding,
                        output_padding, apply_relu_bn):
    """ConvTranspose1d [-> ReLU -> BatchNorm1d] via polyphase decomposition.

    x_cl: [N, L, Ci] channels-last.  w: [Ci, Co, K] (PyTorch ConvTranspose1d layout).
    out[o] = sum_j x[m-j] @ w[:, :, r + j*stride], m=(o+padding)//stride, r=(o+padding)%stride
    """
    N, L, Ci = x_cl.shape
    _, Co, K = w.shape
    assert K % stride == 0, "polyphase path assumes kernel_size % stride == 0"
    T = K // stride                                           # taps per phase
    L_out = (L - 1) * stride - 2 * padding + K + output_padding
    M = (L_out + padding + stride - 1) // stride              # phase groups needed

    left, right = T - 1, max(0, M - L)
    x_pad = jnp.pad(x_cl, ((0, 0), (left, right), (0, 0)))
    taps = [x_pad[:, (T - 1 - j):(T - 1 - j) + M, :] for j in range(T)]
    patches = jnp.stack(taps, axis=2).reshape(N * M, T * Ci)  # [N*M, T*Ci]

    # W_poly[j*Ci+ci, r*Co+co] = w[ci, co, j*stride + r]
    w_poly = w.reshape(Ci, Co, T, stride).transpose(2, 0, 3, 1).reshape(T * Ci, stride * Co)
    b_poly = jnp.tile(b, stride)

    R = N * M
    C_valid = stride * Co
    y, _, _, Ctot, _ = _fused_matmul(patches, w_poly, b_poly,
                                     apply_relu=apply_relu_bn,
                                     compute_stats=False, rows_valid=R)

    def _to_channels_last(buf):
        out = buf[:R, :C_valid].reshape(N, M * stride, Co)    # axis1 index = o + padding
        return out[:, padding:padding + L_out, :]

    if apply_relu_bn:
        # Train-mode BN statistics over the *valid* output positions only.
        y_val = _to_channels_last(y)
        cnt = N * L_out
        mean = jnp.sum(y_val, axis=(0, 1)) / cnt
        var = jnp.maximum(jnp.sum(y_val * y_val, axis=(0, 1)) / cnt - mean * mean, 0.0)
        scale_c = gamma.astype(jnp.float32) * jax.lax.rsqrt(var + _BN_EPS)
        shift_c = beta.astype(jnp.float32) - mean * scale_c
        scale_full = jnp.pad(jnp.tile(scale_c, stride), (0, Ctot - C_valid))
        shift_full = jnp.pad(jnp.tile(shift_c, stride), (0, Ctot - C_valid))
        y = _scale_shift(y, scale_full, shift_full)

    return _to_channels_last(y)


# ----------------------------------------------------------------------------
# DemucsModel parameters + forward.
# ----------------------------------------------------------------------------
def init_params(key, *, sources=1, channels=8, kernel_size=8, depth=4):
    params = {"encoder": [], "decoder": []}
    in_ch = 1
    for i in range(depth):
        out_ch = channels * 2 ** i
        key, k1, k2 = jax.random.split(key, 3)
        bound = 1.0 / float(in_ch * kernel_size) ** 0.5
        w = jax.random.uniform(k1, (out_ch, in_ch, kernel_size), jnp.float32, -bound, bound)
        b = jax.random.uniform(k2, (out_ch,), jnp.float32, -bound, bound)
        params["encoder"].append((w, b, jnp.ones((out_ch,), jnp.float32),
                                  jnp.zeros((out_ch,), jnp.float32)))
        in_ch = out_ch
    for i in range(depth):
        ci = channels * 2 ** (depth - i - 1)
        co = sources if i == depth - 1 else channels * 2 ** (depth - i - 2)
        key, k1, k2 = jax.random.split(key, 3)
        bound = 1.0 / float(ci * kernel_size) ** 0.5
        w = jax.random.uniform(k1, (ci, co, kernel_size), jnp.float32, -bound, bound)
        b = jax.random.uniform(k2, (co,), jnp.float32, -bound, bound)
        params["decoder"].append((w, b, jnp.ones((co,), jnp.float32),
                                  jnp.zeros((co,), jnp.float32)))
    return params


def demucs_forward(params, mix_waveform, *, kernel_size=8, stride=4, depth=4):
    """mix_waveform: [batch, 1, time] (NCL) -> separated sources [batch, sources, time]."""
    input_length = mix_waveform.shape[2]
    x = jnp.transpose(mix_waveform, (0, 2, 1))                # NCL -> NLC, once
    skips = []                                                # computed, never consumed (as in reference)
    for (w, b, g, be) in params["encoder"]:
        x = encoder_conv_layer(x, w, b, g, be, stride=stride, padding=kernel_size // 2)
        skips.append(x)
    for i, (w, b, g, be) in enumerate(params["decoder"]):
        x = decoder_convt_layer(x, w, b, g, be, stride=stride, padding=kernel_size // 2,
                                output_padding=stride - 1,
                                apply_relu_bn=(i < depth - 1))
    x = jnp.transpose(x, (0, 2, 1))                           # NLC -> NCL, once
    L = x.shape[2]
    if L > input_length:
        x = x[:, :, :input_length]
    elif L < input_length:
        x = jnp.pad(x, ((0, 0), (0, 0), (0, input_length - L)))
    return x


if __name__ == "__main__":
    # Small, module-consistent shapes: batch=2, 1 input channel, time=128,
    # channels=8, depth=4, kernel=8, stride=4, sources=1.
    key = jax.random.PRNGKey(0)
    pkey, xkey = jax.random.split(key)
    params = init_params(pkey, sources=1, channels=8, kernel_size=8, depth=4)
    mix = jax.random.normal(xkey, (2, 1, 128), jnp.float32)

    fwd = jax.jit(functools.partial(demucs_forward, kernel_size=8, stride=4, depth=4))
    out = jax.block_until_ready(fwd(params, mix))

    assert out.shape == (2, 1, 128), out.shape
    assert out.dtype == jnp.float32
    assert bool(jnp.all(jnp.isfinite(out)))
    print("KERNEL_OK")
</pallas_src>

<mosaic_0001>
module attributes {stable_mosaic.version = 11 : i64} {
  func.func @_scale_shift_kernel(%arg0: i32, %arg1: memref<72x128xf32, #tpu.memory_space<vmem>>, %arg2: memref<1x128xf32, #tpu.memory_space<vmem>>, %arg3: memref<1x128xf32, #tpu.memory_space<vmem>>, %arg4: memref<72x128xf32, #tpu.memory_space<vmem>>) attributes {dimension_semantics = [#tpu.dimension_semantics<parallel>], iteration_bounds = array<i64: 1>, scalar_prefetch = 0 : i64, scratch_operands = 0 : i64, tpu.core_type = #tpu.core_type<tc>, window_params = [{transform_indices = @transform_0, window_bounds = array<i64: 72, 128>}, {pipeline_mode = #tpu.pipeline_mode<synchronous>, transform_indices = @transform_1, window_bounds = array<i64: 1, 128>}, {pipeline_mode = #tpu.pipeline_mode<synchronous>, transform_indices = @transform_2, window_bounds = array<i64: 1, 128>}, {transform_indices = @transform_3, window_bounds = array<i64: 72, 128>}]} {
    %c0 = arith.constant 0 : index
    %c0_0 = arith.constant 0 : index
    %0 = vector.load %arg1[%c0, %c0_0] : memref<72x128xf32, #tpu.memory_space<vmem>>, vector<72x128xf32>
    %c0_1 = arith.constant 0 : index
    %c0_2 = arith.constant 0 : index
    %1 = vector.load %arg2[%c0_1, %c0_2] : memref<1x128xf32, #tpu.memory_space<vmem>>, vector<1x128xf32>
    %2 = vector.broadcast %1 : vector<1x128xf32> to vector<72x128xf32>
    %3 = arith.mulf %0, %2 : vector<72x128xf32>
    %c0_3 = arith.constant 0 : index
    %c0_4 = arith.constant 0 : index
    %4 = vector.load %arg3[%c0_3, %c0_4] : memref<1x128xf32, #tpu.memory_space<vmem>>, vector<1x128xf32>
    %5 = vector.broadcast %4 : vector<1x128xf32> to vector<72x128xf32>
    %6 = arith.addf %3, %5 : vector<72x128xf32>
    %c0_5 = arith.constant 0 : index
    %c0_6 = arith.constant 0 : index
    %7 = vector.load %arg4[%c0_5, %c0_6] : memref<72x128xf32, #tpu.memory_space<vmem>>, vector<72x128xf32>
    tpu.vector_store %arg4[%c0_5, %c0_6], %6 {strides = array<i32>} : memref<72x128xf32, #tpu.memory_space<vmem>>, vector<72x128xf32>,
    return
  }
  func.func @transform_0(%arg0: i32) -> (i32, i32) {
    %c0_i32 = arith.constant 0 : i32
    %c0_i32_0 = arith.constant 0 : i32
    return %arg0, %c0_i32 : i32, i32
  }
  func.func @transform_1(%arg0: i32) -> (i32, i32) {
    %c0_i32 = arith.constant 0 : i32
    %c0_i32_0 = arith.constant 0 : i32
    %c0_i32_1 = arith.constant 0 : i32
    return %c0_i32, %c0_i32_0 : i32, i32
  }
  func.func @transform_2(%arg0: i32) -> (i32, i32) {
    %c0_i32 = arith.constant 0 : i32
    %c0_i32_0 = arith.constant 0 : i32
    %c0_i32_1 = arith.constant 0 : i32
    return %c0_i32, %c0_i32_0 : i32, i32
  }
  func.func @transform_3(%arg0: i32) -> (i32, i32) {
    %c0_i32 = arith.constant 0 : i32
    %c0_i32_0 = arith.constant 0 : i32
    return %arg0, %c0_i32 : i32, i32
  }
}

module attributes {stable_mosaic.version = 11 : i64} {
  func.func @_mm_bias_act_stats_kernel(%arg0: i32, %arg1: memref<72x8xbf16, #tpu.memory_space<vmem>>, %arg2: memref<8x128xbf16, #tpu.memory_space<vmem>>, %arg3: memref<1x128xf32, #tpu.memory_space<vmem>>, %arg4: memref<72x128xf32, #tpu.memory_space<vmem>>, %arg5: memref<8x128xf32, #tpu.memory_space<vmem>>) attributes {dimension_semantics = [#tpu.dimension_semantics<parallel>], iteration_bounds = array<i64: 1>, scalar_prefetch = 0 : i64, scratch_operands = 0 : i64, tpu.core_type = #tpu.core_type<tc>, window_params = [{transform_indices = @transform_0, window_bounds = array<i64: 72, 8>}, {pipeline_mode = #tpu.pipeline_mode<synchronous>, transform_indices = @transform_1, window_bounds = array<i64: 8, 128>}, {pipeline_mode = #tpu.pipeline_mode<synchronous>, transform_indices = @transform_2, window_bounds = array<i64: 1, 128>}, {transform_indices = @transform_3, window_bounds = array<i64: 72, 128>}, {transform_indices = @transform_4, window_bounds = array<i64: 8, 128>}]} {
    %c0 = arith.constant 0 : index
    %c0_0 = arith.constant 0 : index
    %0 = vector.load %arg1[%c0, %c0_0] : memref<72x8xbf16, #tpu.memory_space<vmem>>, vector<72x8xbf16>
    %c0_1 = arith.constant 0 : index
    %c0_2 = arith.constant 0 : index
    %1 = vector.load %arg2[%c0_1, %c0_2] : memref<8x128xbf16, #tpu.memory_space<vmem>>, vector<8x128xbf16>
    %cst = arith.constant dense<0.000000e+00> : vector<72x128xf32>
    %2 = tpu.matmul %0, %1, %cst {dimension_numbers = #tpu.dot_dimension_numbers<[1], [0], [0], [1], [0, 0, 1, 1], [], []>} : vector<72x8xbf16>, vector<8x128xbf16>, vector<72x128xf32> -> vector<72x128xf32>
    %c0_3 = arith.constant 0 : index
    %c0_4 = arith.constant 0 : index
    %3 = vector.load %arg3[%c0_3, %c0_4] : memref<1x128xf32, #tpu.memory_space<vmem>>, vector<1x128xf32>
    %4 = vector.broadcast %3 : vector<1x128xf32> to vector<72x128xf32>
    %5 = arith.addf %2, %4 : vector<72x128xf32>
    %cst_5 = arith.constant 0.000000e+00 : f32
    %6 = vector.broadcast %cst_5 : f32 to vector<72x128xf32>
    %7 = arith.maximumf %5, %6 : vector<72x128xf32>
    %c0_6 = arith.constant 0 : index
    %c0_7 = arith.constant 0 : index
    %8 = vector.load %arg4[%c0_6, %c0_7] : memref<72x128xf32, #tpu.memory_space<vmem>>, vector<72x128xf32>
    tpu.vector_store %arg4[%c0_6, %c0_7], %7 {strides = array<i32>} : memref<72x128xf32, #tpu.memory_space<vmem>>, vector<72x128xf32>,
    %c72_i32 = arith.constant 72 : i32
    %9 = arith.muli %arg0, %c72_i32 : i32
    %10 = tpu.iota {dimensions = array<i32: 0>} : vector<72x1xi32>
    %11 = vector.broadcast %9 : i32 to vector<72x1xi32>
    %12 = arith.addi %11, %10 : vector<72x1xi32>
    %c66_i32 = arith.constant 66 : i32
    %13 = vector.broadcast %c66_i32 : i32 to vector<72x1xi32>
    %14 = arith.cmpi slt, %12, %13 : vector<72x1xi32>
    %15 = arith.extui %14 : vector<72x1xi1> to vector<72x1xi32>
    %16 = arith.sitofp %15 : vector<72x1xi32> to vector<72x1xf32>
    %17 = vector.broadcast %16 : vector<72x1xf32> to vector<72x128xf32>
    %18 = arith.mulf %7, %17 : vector<72x128xf32>
    %cst_8 = arith.constant dense<0.000000e+00> : vector<128xf32>
    %19 = vector.multi_reduction <add>, %18, %cst_8 [0] : vector<72x128xf32> to vector<128xf32>
    %20 = vector.shape_cast %19 : vector<128xf32> to vector<1x128xf32>
    %21 = arith.mulf %18, %18 : vector<72x128xf32>
    %cst_9 = arith.constant dense<0.000000e+00> : vector<128xf32>
    %22 = vector.multi_reduction <add>, %21, %cst_9 [0] : vector<72x128xf32> to vector<128xf32>
    %23 = vector.shape_cast %22 : vector<128xf32> to vector<1x128xf32>
    %cst_10 = arith.constant 0.000000e+00 : f32
    %24 = vector.broadcast %cst_10 : f32 to vector<6x128xf32>
    %25 = tpu.concatenate %20, %23, %24 in 0 : vector<1x128xf32>, vector<1x128xf32>, vector<6x128xf32> -> vector<8x128xf32>
    %c0_11 = arith.constant 0 : index
    %c0_12 = arith.constant 0 : index
    %26 = vector.load %arg5[%c0_11, %c0_12] : memref<8x128xf32, #tpu.memory_space<vmem>>, vector<8x128xf32>
    tpu.vector_store %arg5[%c0_11, %c0_12], %25 {strides = array<i32>} : memref<8x128xf32, #tpu.memory_space<vmem>>, vector<8x128xf32>,
    return
  }
  func.func @transform_0(%arg0: i32) -> (i32, i32) {
    %c0_i32 = arith.constant 0 : i32
    %c0_i32_0 = arith.constant 0 : i32
    return %arg0, %c0_i32 : i32, i32
  }
  func.func @transform_1(%arg0: i32) -> (i32, i32) {
    %c0_i32 = arith.constant 0 : i32
    %c0_i32_0 = arith.constant 0 : i32
    %c0_i32_1 = arith.constant 0 : i32
    return %c0_i32, %c0_i32_0 : i32, i32
  }
  func.func @transform_2(%arg0: i32) -> (i32, i32) {
    %c0_i32 = arith.constant 0 : i32
    %c0_i32_0 = arith.constant 0 : i32
    %c0_i32_1 = arith.constant 0 : i32
    return %c0_i32, %c0_i32_0 : i32, i32
  }
  func.func @transform_3(%arg0: i32) -> (i32, i32) {
    %c0_i32 = arith.constant 0 : i32
    %c0_i32_0 = arith.constant 0 : i32
    return %arg0, %c0_i32 : i32, i32
  }
  func.func @transform_4(%arg0: i32) -> (i32, i32) {
    %c0_i32 = arith.constant 0 : i32
    %c0_i32_0 = arith.constant 0 : i32
    return %arg0, %c0_i32 : i32, i32
  }
}

module attributes {stable_mosaic.version = 11 : i64} {
  func.func @_scale_shift_kernel(%arg0: i32, %arg1: memref<24x128xf32, #tpu.memory_space<vmem>>, %arg2: memref<1x128xf32, #tpu.memory_space<vmem>>, %arg3: memref<1x128xf32, #tpu.memory_space<vmem>>, %arg4: memref<24x128xf32, #tpu.memory_space<vmem>>) attributes {dimension_semantics = [#tpu.dimension_semantics<parallel>], iteration_bounds = array<i64: 1>, scalar_prefetch = 0 : i64, scratch_operands = 0 : i64, tpu.core_type = #tpu.core_type<tc>, window_params = [{transform_indices = @transform_0, window_bounds = array<i64: 24, 128>}, {pipeline_mode = #tpu.pipeline_mode<synchronous>, transform_indices = @transform_1, window_bounds = array<i64: 1, 128>}, {pipeline_mode = #tpu.pipeline_mode<synchronous>, transform_indices = @transform_2, window_bounds = array<i64: 1, 128>}, {transform_indices = @transform_3, window_bounds = array<i64: 24, 128>}]} {
    %c0 = arith.constant 0 : index
    %c0_0 = arith.constant 0 : index
    %0 = vector.load %arg1[%c0, %c0_0] : memref<24x128xf32, #tpu.memory_space<vmem>>, vector<24x128xf32>
    %c0_1 = arith.constant 0 : index
    %c0_2 = arith.constant 0 : index
    %1 = vector.load %arg2[%c0_1, %c0_2] : memref<1x128xf32, #tpu.memory_space<vmem>>, vector<1x128xf32>
    %2 = vector.broadcast %1 : vector<1x128xf32> to vector<24x128xf32>
    %3 = arith.mulf %0, %2 : vector<24x128xf32>
    %c0_3 = arith.constant 0 : index
    %c0_4 = arith.constant 0 : index
    %4 = vector.load %arg3[%c0_3, %c0_4] : memref<1x128xf32, #tpu.memory_space<vmem>>, vector<1x128xf32>
    %5 = vector.broadcast %4 : vector<1x128xf32> to vector<24x128xf32>
    %6 = arith.addf %3, %5 : vector<24x128xf32>
    %c0_5 = arith.constant 0 : index
    %c0_6 = arith.constant 0 : index
    %7 = vector.load %arg4[%c0_5, %c0_6] : memref<24x128xf32, #tpu.memory_space<vmem>>, vector<24x128xf32>
    tpu.vector_store %arg4[%c0_5, %c0_6], %6 {strides = array<i32>} : memref<24x128xf32, #tpu.memory_space<vmem>>, vector<24x128xf32>,
    return
  }
  func.func @transform_0(%arg0: i32) -> (i32, i32) {
    %c0_i32 = arith.constant 0 : i32
    %c0_i32_0 = arith.constant 0 : i32
    return %arg0, %c0_i32 : i32, i32
  }
  func.func @transform_1(%arg0: i32) -> (i32, i32) {
    %c0_i32 = arith.constant 0 : i32
    %c0_i32_0 = arith.constant 0 : i32
    %c0_i32_1 = arith.constant 0 : i32
    return %c0_i32, %c0_i32_0 : i32, i32
  }
  func.func @transform_2(%arg0: i32) -> (i32, i32) {
    %c0_i32 = arith.constant 0 : i32
    %c0_i32_0 = arith.constant 0 : i32
    %c0_i32_1 = arith.constant 0 : i32
    return %c0_i32, %c0_i32_0 : i32, i32
  }
  func.func @transform_3(%arg0: i32) -> (i32, i32) {
    %c0_i32 = arith.constant 0 : i32
    %c0_i32_0 = arith.constant 0 : i32
    return %arg0, %c0_i32 : i32, i32
  }
}

module attributes {stable_mosaic.version = 11 : i64} {
  func.func @_mm_bias_act_stats_kernel(%arg0: i32, %arg1: memref<24x64xbf16, #tpu.memory_space<vmem>>, %arg2: memref<64x128xbf16, #tpu.memory_space<vmem>>, %arg3: memref<1x128xf32, #tpu.memory_space<vmem>>, %arg4: memref<24x128xf32, #tpu.memory_space<vmem>>, %arg5: memref<8x128xf32, #tpu.memory_space<vmem>>) attributes {dimension_semantics = [#tpu.dimension_semantics<parallel>], iteration_bounds = array<i64: 1>, scalar_prefetch = 0 : i64, scratch_operands = 0 : i64, tpu.core_type = #tpu.core_type<tc>, window_params = [{transform_indices = @transform_0, window_bounds = array<i64: 24, 64>}, {pipeline_mode = #tpu.pipeline_mode<synchronous>, transform_indices = @transform_1, window_bounds = array<i64: 64, 128>}, {pipeline_mode = #tpu.pipeline_mode<synchronous>, transform_indices = @transform_2, window_bounds = array<i64: 1, 128>}, {transform_indices = @transform_3, window_bounds = array<i64: 24, 128>}, {transform_indices = @transform_4, window_bounds = array<i64: 8, 128>}]} {
    %c0 = arith.constant 0 : index
    %c0_0 = arith.constant 0 : index
    %0 = vector.load %arg1[%c0, %c0_0] : memref<24x64xbf16, #tpu.memory_space<vmem>>, vector<24x64xbf16>
    %c0_1 = arith.constant 0 : index
    %c0_2 = arith.constant 0 : index
    %1 = vector.load %arg2[%c0_1, %c0_2] : memref<64x128xbf16, #tpu.memory_space<vmem>>, vector<64x128xbf16>
    %cst = arith.constant dense<0.000000e+00> : vector<24x128xf32>
    %2 = tpu.matmul %0, %1, %cst {dimension_numbers = #tpu.dot_dimension_numbers<[1], [0], [0], [1], [0, 0, 1, 1], [], []>} : vector<24x64xbf16>, vector<64x128xbf16>, vector<24x128xf32> -> vector<24x128xf32>
    %c0_3 = arith.constant 0 : index
    %c0_4 = arith.constant 0 : index
    %3 = vector.load %arg3[%c0_3, %c0_4] : memref<1x128xf32, #tpu.memory_space<vmem>>, vector<1x128xf32>
    %4 = vector.broadcast %3 : vector<1x128xf32> to vector<24x128xf32>
    %5 = arith.addf %2, %4 : vector<24x128xf32>
    %cst_5 = arith.constant 0.000000e+00 : f32
    %6 = vector.broadcast %cst_5 : f32 to vector<24x128xf32>
    %7 = arith.maximumf %5, %6 : vector<24x128xf32>
    %c0_6 = arith.constant 0 : index
    %c0_7 = arith.constant 0 : index
    %8 = vector.load %arg4[%c0_6, %c0_7] : memref<24x128xf32, #tpu.memory_space<vmem>>, vector<24x128xf32>
    tpu.vector_store %arg4[%c0_6, %c0_7], %7 {strides = array<i32>} : memref<24x128xf32, #tpu.memory_space<vmem>>, vector<24x128xf32>,
    %c24_i32 = arith.constant 24 : i32
    %9 = arith.muli %arg0, %c24_i32 : i32
    %10 = tpu.iota {dimensions = array<i32: 0>} : vector<24x1xi32>
    %11 = vector.broadcast %9 : i32 to vector<24x1xi32>
    %12 = arith.addi %11, %10 : vector<24x1xi32>
    %c18_i32 = arith.constant 18 : i32
    %13 = vector.broadcast %c18_i32 : i32 to vector<24x1xi32>
    %14 = arith.cmpi slt, %12, %13 : vector<24x1xi32>
    %15 = arith.extui %14 : vector<24x1xi1> to vector<24x1xi32>
    %16 = arith.sitofp %15 : vector<24x1xi32> to vector<24x1xf32>
    %17 = vector.broadcast %16 : vector<24x1xf32> to vector<24x128xf32>
    %18 = arith.mulf %7, %17 : vector<24x128xf32>
    %cst_8 = arith.constant dense<0.000000e+00> : vector<128xf32>
    %19 = vector.multi_reduction <add>, %18, %cst_8 [0] : vector<24x128xf32> to vector<128xf32>
    %20 = vector.shape_cast %19 : vector<128xf32> to vector<1x128xf32>
    %21 = arith.mulf %18, %18 : vector<24x128xf32>
    %cst_9 = arith.constant dense<0.000000e+00> : vector<128xf32>
    %22 = vector.multi_reduction <add>, %21, %cst_9 [0] : vector<24x128xf32> to vector<128xf32>
    %23 = vector.shape_cast %22 : vector<128xf32> to vector<1x128xf32>
    %cst_10 = arith.constant 0.000000e+00 : f32
    %24 = vector.broadcast %cst_10 : f32 to vector<6x128xf32>
    %25 = tpu.concatenate %20, %23, %24 in 0 : vector<1x128xf32>, vector<1x128xf32>, vector<6x128xf32> -> vector<8x128xf32>
    %c0_11 = arith.constant 0 : index
    %c0_12 = arith.constant 0 : index
    %26 = vector.load %arg5[%c0_11, %c0_12] : memref<8x128xf32, #tpu.memory_space<vmem>>, vector<8x128xf32>
    tpu.vector_store %arg5[%c0_11, %c0_12], %25 {strides = array<i32>} : memref<8x128xf32, #tpu.memory_space<vmem>>, vector<8x128xf32>,
    return
  }
  func.func @transform_0(%arg0: i32) -> (i32, i32) {
    %c0_i32 = arith.constant 0 : i32
    %c0_i32_0 = arith.constant 0 : i32
    return %arg0, %c0_i32 : i32, i32
  }
  func.func @transform_1(%arg0: i32) -> (i32, i32) {
    %c0_i32 = arith.constant 0 : i32
    %c0_i32_0 = arith.constant 0 : i32
    %c0_i32_1 = arith.constant 0 : i32
    return %c0_i32, %c0_i32_0 : i32, i32
  }
  func.func @transform_2(%arg0: i32) -> (i32, i32) {
    %c0_i32 = arith.constant 0 : i32
    %c0_i32_0 = arith.constant 0 : i32
    %c0_i32_1 = arith.constant 0 : i32
    return %c0_i32, %c0_i32_0 : i32, i32
  }
  func.func @transform_3(%arg0: i32) -> (i32, i32) {
    %c0_i32 = arith.constant 0 : i32
    %c0_i32_0 = arith.constant 0 : i32
    return %arg0, %c0_i32 : i32, i32
  }
  func.func @transform_4(%arg0: i32) -> (i32, i32) {
    %c0_i32 = arith.constant 0 : i32
    %c0_i32_0 = arith.constant 0 : i32
    return %arg0, %c0_i32 : i32, i32
  }
}

module attributes {stable_mosaic.version = 11 : i64} {
  func.func @_scale_shift_kernel(%arg0: i32, %arg1: memref<8x128xf32, #tpu.memory_space<vmem>>, %arg2: memref<1x128xf32, #tpu.memory_space<vmem>>, %arg3: memref<1x128xf32, #tpu.memory_space<vmem>>, %arg4: memref<8x128xf32, #tpu.memory_space<vmem>>) attributes {dimension_semantics = [#tpu.dimension_semantics<parallel>], iteration_bounds = array<i64: 1>, scalar_prefetch = 0 : i64, scratch_operands = 0 : i64, tpu.core_type = #tpu.core_type<tc>, window_params = [{transform_indices = @transform_0, window_bounds = array<i64: 8, 128>}, {pipeline_mode = #tpu.pipeline_mode<synchronous>, transform_indices = @transform_1, window_bounds = array<i64: 1, 128>}, {pipeline_mode = #tpu.pipeline_mode<synchronous>, transform_indices = @transform_2, window_bounds = array<i64: 1, 128>}, {transform_indices = @transform_3, window_bounds = array<i64: 8, 128>}]} {
    %c0 = arith.constant 0 : index
    %c0_0 = arith.constant 0 : index
    %0 = vector.load %arg1[%c0, %c0_0] : memref<8x128xf32, #tpu.memory_space<vmem>>, vector<8x128xf32>
    %c0_1 = arith.constant 0 : index
    %c0_2 = arith.constant 0 : index
    %1 = vector.load %arg2[%c0_1, %c0_2] : memref<1x128xf32, #tpu.memory_space<vmem>>, vector<1x128xf32>
    %2 = vector.broadcast %1 : vector<1x128xf32> to vector<8x128xf32>
    %3 = arith.mulf %0, %2 : vector<8x128xf32>
    %c0_3 = arith.constant 0 : index
    %c0_4 = arith.constant 0 : index
    %4 = vector.load %arg3[%c0_3, %c0_4] : memref<1x128xf32, #tpu.memory_space<vmem>>, vector<1x128xf32>
    %5 = vector.broadcast %4 : vector<1x128xf32> to vector<8x128xf32>
    %6 = arith.addf %3, %5 : vector<8x128xf32>
    %c0_5 = arith.constant 0 : index
    %c0_6 = arith.constant 0 : index
    %7 = vector.load %arg4[%c0_5, %c0_6] : memref<8x128xf32, #tpu.memory_space<vmem>>, vector<8x128xf32>
    tpu.vector_store %arg4[%c0_5, %c0_6], %6 {strides = array<i32>} : memref<8x128xf32, #tpu.memory_space<vmem>>, vector<8x128xf32>,
    return
  }
  func.func @transform_0(%arg0: i32) -> (i32, i32) {
    %c0_i32 = arith.constant 0 : i32
    %c0_i32_0 = arith.constant 0 : i32
    return %arg0, %c0_i32 : i32, i32
  }
  func.func @transform_1(%arg0: i32) -> (i32, i32) {
    %c0_i32 = arith.constant 0 : i32
    %c0_i32_0 = arith.constant 0 : i32
    %c0_i32_1 = arith.constant 0 : i32
    return %c0_i32, %c0_i32_0 : i32, i32
  }
  func.func @transform_2(%arg0: i32) -> (i32, i32) {
    %c0_i32 = arith.constant 0 : i32
    %c0_i32_0 = arith.constant 0 : i32
    %c0_i32_1 = arith.constant 0 : i32
    return %c0_i32, %c0_i32_0 : i32, i32
  }
  func.func @transform_3(%arg0: i32) -> (i32, i32) {
    %c0_i32 = arith.constant 0 : i32
    %c0_i32_0 = arith.constant 0 : i32
    return %arg0, %c0_i32 : i32, i32
  }
}

module attributes {stable_mosaic.version = 11 : i64} {
  func.func @_mm_bias_act_stats_kernel(%arg0: i32, %arg1: memref<8x128xbf16, #tpu.memory_space<vmem>>, %arg2: memref<128x128xbf16, #tpu.memory_space<vmem>>, %arg3: memref<1x128xf32, #tpu.memory_space<vmem>>, %arg4: memref<8x128xf32, #tpu.memory_space<vmem>>, %arg5: memref<8x128xf32, #tpu.memory_space<vmem>>) attributes {dimension_semantics = [#tpu.dimension_semantics<parallel>], iteration_bounds = array<i64: 1>, scalar_prefetch = 0 : i64, scratch_operands = 0 : i64, tpu.core_type = #tpu.core_type<tc>, window_params = [{transform_indices = @transform_0, window_bounds = array<i64: 8, 128>}, {pipeline_mode = #tpu.pipeline_mode<synchronous>, transform_indices = @transform_1, window_bounds = array<i64: 128, 128>}, {pipeline_mode = #tpu.pipeline_mode<synchronous>, transform_indices = @transform_2, window_bounds = array<i64: 1, 128>}, {transform_indices = @transform_3, window_bounds = array<i64: 8, 128>}, {transform_indices = @transform_4, window_bounds = array<i64: 8, 128>}]} {
    %c0 = arith.constant 0 : index
    %c0_0 = arith.constant 0 : index
    %0 = vector.load %arg1[%c0, %c0_0] : memref<8x128xbf16, #tpu.memory_space<vmem>>, vector<8x128xbf16>
    %c0_1 = arith.constant 0 : index
    %c0_2 = arith.constant 0 : index
    %1 = vector.load %arg2[%c0_1, %c0_2] : memref<128x128xbf16, #tpu.memory_space<vmem>>, vector<128x128xbf16>
    %cst = arith.constant dense<0.000000e+00> : vector<8x128xf32>
    %2 = tpu.matmul %0, %1, %cst {dimension_numbers = #tpu.dot_dimension_numbers<[1], [0], [0], [1], [0, 0, 1, 1], [], []>} : vector<8x128xbf16>, vector<128x128xbf16>, vector<8x128xf32> -> vector<8x128xf32>
    %c0_3 = arith.constant 0 : index
    %c0_4 = arith.constant 0 : index
    %3 = vector.load %arg3[%c0_3, %c0_4] : memref<1x128xf32, #tpu.memory_space<vmem>>, vector<1x128xf32>
    %4 = vector.broadcast %3 : vector<1x128xf32> to vector<8x128xf32>
    %5 = arith.addf %2, %4 : vector<8x128xf32>
    %cst_5 = arith.constant 0.000000e+00 : f32
    %6 = vector.broadcast %cst_5 : f32 to vector<8x128xf32>
    %7 = arith.maximumf %5, %6 : vector<8x128xf32>
    %c0_6 = arith.constant 0 : index
    %c0_7 = arith.constant 0 : index
    %8 = vector.load %arg4[%c0_6, %c0_7] : memref<8x128xf32, #tpu.memory_space<vmem>>, vector<8x128xf32>
    tpu.vector_store %arg4[%c0_6, %c0_7], %7 {strides = array<i32>} : memref<8x128xf32, #tpu.memory_space<vmem>>, vector<8x128xf32>,
    %c8_i32 = arith.constant 8 : i32
    %9 = arith.muli %arg0, %c8_i32 : i32
    %10 = tpu.iota {dimensions = array<i32: 0>} : vector<8x1xi32>
    %11 = vector.broadcast %9 : i32 to vector<8x1xi32>
    %12 = arith.addi %11, %10 : vector<8x1xi32>
    %c6_i32 = arith.constant 6 : i32
    %13 = vector.broadcast %c6_i32 : i32 to vector<8x1xi32>
    %14 = arith.cmpi slt, %12, %13 : vector<8x1xi32>
    %15 = arith.extui %14 : vector<8x1xi1> to vector<8x1xi32>
    %16 = arith.sitofp %15 : vector<8x1xi32> to vector<8x1xf32>
    %17 = vector.broadcast %16 : vector<8x1xf32> to vector<8x128xf32>
    %18 = arith.mulf %7, %17 : vector<8x128xf32>
    %cst_8 = arith.constant dense<0.000000e+00> : vector<128xf32>
    %19 = vector.multi_reduction <add>, %18, %cst_8 [0] : vector<8x128xf32> to vector<128xf32>
    %20 = vector.shape_cast %19 : vector<128xf32> to vector<1x128xf32>
    %21 = arith.mulf %18, %18 : vector<8x128xf32>
    %cst_9 = arith.constant dense<0.000000e+00> : vector<128xf32>
    %22 = vector.multi_reduction <add>, %21, %cst_9 [0] : vector<8x128xf32> to vector<128xf32>
    %23 = vector.shape_cast %22 : vector<128xf32> to vector<1x128xf32>
    %cst_10 = arith.constant 0.000000e+00 : f32
    %24 = vector.broadcast %cst_10 : f32 to vector<6x128xf32>
    %25 = tpu.concatenate %20, %23, %24 in 0 : vector<1x128xf32>, vector<1x128xf32>, vector<6x128xf32> -> vector<8x128xf32>
    %c0_11 = arith.constant 0 : index
    %c0_12 = arith.constant 0 : index
    %26 = vector.load %arg5[%c0_11, %c0_12] : memref<8x128xf32, #tpu.memory_space<vmem>>, vector<8x128xf32>
    tpu.vector_store %arg5[%c0_11, %c0_12], %25 {strides = array<i32>} : memref<8x128xf32, #tpu.memory_space<vmem>>, vector<8x128xf32>,
    return
  }
  func.func @transform_0(%arg0: i32) -> (i32, i32) {
    %c0_i32 = arith.constant 0 : i32
    %c0_i32_0 = arith.constant 0 : i32
    return %arg0, %c0_i32 : i32, i32
  }
  func.func @transform_1(%arg0: i32) -> (i32, i32) {
    %c0_i32 = arith.constant 0 : i32
    %c0_i32_0 = arith.constant 0 : i32
    %c0_i32_1 = arith.constant 0 : i32
    return %c0_i32, %c0_i32_0 : i32, i32
  }
  func.func @transform_2(%arg0: i32) -> (i32, i32) {
    %c0_i32 = arith.constant 0 : i32
    %c0_i32_0 = arith.constant 0 : i32
    %c0_i32_1 = arith.constant 0 : i32
    return %c0_i32, %c0_i32_0 : i32, i32
  }
  func.func @transform_3(%arg0: i32) -> (i32, i32) {
    %c0_i32 = arith.constant 0 : i32
    %c0_i32_0 = arith.constant 0 : i32
    return %arg0, %c0_i32 : i32, i32
  }
  func.func @transform_4(%arg0: i32) -> (i32, i32) {
    %c0_i32 = arith.constant 0 : i32
    %c0_i32_0 = arith.constant 0 : i32
    return %arg0, %c0_i32 : i32, i32
  }
}

module attributes {stable_mosaic.version = 11 : i64} {
  func.func @_mm_bias_act_stats_kernel(%arg0: i32, %arg1: memref<8x256xbf16, #tpu.memory_space<vmem>>, %arg2: memref<256x128xbf16, #tpu.memory_space<vmem>>, %arg3: memref<1x128xf32, #tpu.memory_space<vmem>>, %arg4: memref<8x128xf32, #tpu.memory_space<vmem>>, %arg5: memref<8x128xf32, #tpu.memory_space<vmem>>) attributes {dimension_semantics = [#tpu.dimension_semantics<parallel>], iteration_bounds = array<i64: 1>, scalar_prefetch = 0 : i64, scratch_operands = 0 : i64, tpu.core_type = #tpu.core_type<tc>, window_params = [{transform_indices = @transform_0, window_bounds = array<i64: 8, 256>}, {pipeline_mode = #tpu.pipeline_mode<synchronous>, transform_indices = @transform_1, window_bounds = array<i64: 256, 128>}, {pipeline_mode = #tpu.pipeline_mode<synchronous>, transform_indices = @transform_2, window_bounds = array<i64: 1, 128>}, {transform_indices = @transform_3, window_bounds = array<i64: 8, 128>}, {transform_indices = @transform_4, window_bounds = array<i64: 8, 128>}]} {
    %c0 = arith.constant 0 : index
    %c0_0 = arith.constant 0 : index
    %0 = vector.load %arg1[%c0, %c0_0] : memref<8x256xbf16, #tpu.memory_space<vmem>>, vector<8x256xbf16>
    %c0_1 = arith.constant 0 : index
    %c0_2 = arith.constant 0 : index
    %1 = vector.load %arg2[%c0_1, %c0_2] : memref<256x128xbf16, #tpu.memory_space<vmem>>, vector<256x128xbf16>
    %cst = arith.constant dense<0.000000e+00> : vector<8x128xf32>
    %2 = tpu.matmul %0, %1, %cst {dimension_numbers = #tpu.dot_dimension_numbers<[1], [0], [0], [1], [0, 0, 1, 1], [], []>} : vector<8x256xbf16>, vector<256x128xbf16>, vector<8x128xf32> -> vector<8x128xf32>
    %c0_3 = arith.constant 0 : index
    %c0_4 = arith.constant 0 : index
    %3 = vector.load %arg3[%c0_3, %c0_4] : memref<1x128xf32, #tpu.memory_space<vmem>>, vector<1x128xf32>
    %4 = vector.broadcast %3 : vector<1x128xf32> to vector<8x128xf32>
    %5 = arith.addf %2, %4 : vector<8x128xf32>
    %cst_5 = arith.constant 0.000000e+00 : f32
    %6 = vector.broadcast %cst_5 : f32 to vector<8x128xf32>
    %7 = arith.maximumf %5, %6 : vector<8x128xf32>
    %c0_6 = arith.constant 0 : index
    %c0_7 = arith.constant 0 : index
    %8 = vector.load %arg4[%c0_6, %c0_7] : memref<8x128xf32, #tpu.memory_space<vmem>>, vector<8x128xf32>
    tpu.vector_store %arg4[%c0_6, %c0_7], %7 {strides = array<i32>} : memref<8x128xf32, #tpu.memory_space<vmem>>, vector<8x128xf32>,
    %c8_i32 = arith.constant 8 : i32
    %9 = arith.muli %arg0, %c8_i32 : i32
    %10 = tpu.iota {dimensions = array<i32: 0>} : vector<8x1xi32>
    %11 = vector.broadcast %9 : i32 to vector<8x1xi32>
    %12 = arith.addi %11, %10 : vector<8x1xi32>
    %c2_i32 = arith.constant 2 : i32
    %13 = vector.broadcast %c2_i32 : i32 to vector<8x1xi32>
    %14 = arith.cmpi slt, %12, %13 : vector<8x1xi32>
    %15 = arith.extui %14 : vector<8x1xi1> to vector<8x1xi32>
    %16 = arith.sitofp %15 : vector<8x1xi32> to vector<8x1xf32>
    %17 = vector.broadcast %16 : vector<8x1xf32> to vector<8x128xf32>
    %18 = arith.mulf %7, %17 : vector<8x128xf32>
    %cst_8 = arith.constant dense<0.000000e+00> : vector<128xf32>
    %19 = vector.multi_reduction <add>, %18, %cst_8 [0] : vector<8x128xf32> to vector<128xf32>
    %20 = vector.shape_cast %19 : vector<128xf32> to vector<1x128xf32>
    %21 = arith.mulf %18, %18 : vector<8x128xf32>
    %cst_9 = arith.constant dense<0.000000e+00> : vector<128xf32>
    %22 = vector.multi_reduction <add>, %21, %cst_9 [0] : vector<8x128xf32> to vector<128xf32>
    %23 = vector.shape_cast %22 : vector<128xf32> to vector<1x128xf32>
    %cst_10 = arith.constant 0.000000e+00 : f32
    %24 = vector.broadcast %cst_10 : f32 to vector<6x128xf32>
    %25 = tpu.concatenate %20, %23, %24 in 0 : vector<1x128xf32>, vector<1x128xf32>, vector<6x128xf32> -> vector<8x128xf32>
    %c0_11 = arith.constant 0 : index
    %c0_12 = arith.constant 0 : index
    %26 = vector.load %arg5[%c0_11, %c0_12] : memref<8x128xf32, #tpu.memory_space<vmem>>, vector<8x128xf32>
    tpu.vector_store %arg5[%c0_11, %c0_12], %25 {strides = array<i32>} : memref<8x128xf32, #tpu.memory_space<vmem>>, vector<8x128xf32>,
    return
  }
  func.func @transform_0(%arg0: i32) -> (i32, i32) {
    %c0_i32 = arith.constant 0 : i32
    %c0_i32_0 = arith.constant 0 : i32
    return %arg0, %c0_i32 : i32, i32
  }
  func.func @transform_1(%arg0: i32) -> (i32, i32) {
    %c0_i32 = arith.constant 0 : i32
    %c0_i32_0 = arith.constant 0 : i32
    %c0_i32_1 = arith.constant 0 : i32
    return %c0_i32, %c0_i32_0 : i32, i32
  }
  func.func @transform_2(%arg0: i32) -> (i32, i32) {
    %c0_i32 = arith.constant 0 : i32
    %c0_i32_0 = arith.constant 0 : i32
    %c0_i32_1 = arith.constant 0 : i32
    return %c0_i32, %c0_i32_0 : i32, i32
  }
  func.func @transform_3(%arg0: i32) -> (i32, i32) {
    %c0_i32 = arith.constant 0 : i32
    %c0_i32_0 = arith.constant 0 : i32
    return %arg0, %c0_i32 : i32, i32
  }
  func.func @transform_4(%arg0: i32) -> (i32, i32) {
    %c0_i32 = arith.constant 0 : i32
    %c0_i32_0 = arith.constant 0 : i32
    return %arg0, %c0_i32 : i32, i32
  }
}

module attributes {stable_mosaic.version = 11 : i64} {
  func.func @_mm_bias_act_kernel(%arg0: i32, %arg1: memref<8x128xbf16, #tpu.memory_space<vmem>>, %arg2: memref<128x128xbf16, #tpu.memory_space<vmem>>, %arg3: memref<1x128xf32, #tpu.memory_space<vmem>>, %arg4: memref<8x128xf32, #tpu.memory_space<vmem>>) attributes {dimension_semantics = [#tpu.dimension_semantics<parallel>], iteration_bounds = array<i64: 1>, scalar_prefetch = 0 : i64, scratch_operands = 0 : i64, tpu.core_type = #tpu.core_type<tc>, window_params = [{transform_indices = @transform_0, window_bounds = array<i64: 8, 128>}, {pipeline_mode = #tpu.pipeline_mode<synchronous>, transform_indices = @transform_1, window_bounds = array<i64: 128, 128>}, {pipeline_mode = #tpu.pipeline_mode<synchronous>, transform_indices = @transform_2, window_bounds = array<i64: 1, 128>}, {transform_indices = @transform_3, window_bounds = array<i64: 8, 128>}]} {
    %c0 = arith.constant 0 : index
    %c0_0 = arith.constant 0 : index
    %0 = vector.load %arg1[%c0, %c0_0] : memref<8x128xbf16, #tpu.memory_space<vmem>>, vector<8x128xbf16>
    %c0_1 = arith.constant 0 : index
    %c0_2 = arith.constant 0 : index
    %1 = vector.load %arg2[%c0_1, %c0_2] : memref<128x128xbf16, #tpu.memory_space<vmem>>, vector<128x128xbf16>
    %cst = arith.constant dense<0.000000e+00> : vector<8x128xf32>
    %2 = tpu.matmul %0, %1, %cst {dimension_numbers = #tpu.dot_dimension_numbers<[1], [0], [0], [1], [0, 0, 1, 1], [], []>} : vector<8x128xbf16>, vector<128x128xbf16>, vector<8x128xf32> -> vector<8x128xf32>
    %c0_3 = arith.constant 0 : index
    %c0_4 = arith.constant 0 : index
    %3 = vector.load %arg3[%c0_3, %c0_4] : memref<1x128xf32, #tpu.memory_space<vmem>>, vector<1x128xf32>
    %4 = vector.broadcast %3 : vector<1x128xf32> to vector<8x128xf32>
    %5 = arith.addf %2, %4 : vector<8x128xf32>
    %cst_5 = arith.constant 0.000000e+00 : f32
    %6 = vector.broadcast %cst_5 : f32 to vector<8x128xf32>
    %7 = arith.maximumf %5, %6 : vector<8x128xf32>
    %c0_6 = arith.constant 0 : index
    %c0_7 = arith.constant 0 : index
    %8 = vector.load %arg4[%c0_6, %c0_7] : memref<8x128xf32, #tpu.memory_space<vmem>>, vector<8x128xf32>
    tpu.vector_store %arg4[%c0_6, %c0_7], %7 {strides = array<i32>} : memref<8x128xf32, #tpu.memory_space<vmem>>, vector<8x128xf32>,
    return
  }
  func.func @transform_0(%arg0: i32) -> (i32, i32) {
    %c0_i32 = arith.constant 0 : i32
    %c0_i32_0 = arith.constant 0 : i32
    return %arg0, %c0_i32 : i32, i32
  }
  func.func @transform_1(%arg0: i32) -> (i32, i32) {
    %c0_i32 = arith.constant 0 : i32
    %c0_i32_0 = arith.constant 0 : i32
    %c0_i32_1 = arith.constant 0 : i32
    return %c0_i32, %c0_i32_0 : i32, i32
  }
  func.func @transform_2(%arg0: i32) -> (i32, i32) {
    %c0_i32 = arith.constant 0 : i32
    %c0_i32_0 = arith.constant 0 : i32
    %c0_i32_1 = arith.constant 0 : i32
    return %c0_i32, %c0_i32_0 : i32, i32
  }
  func.func @transform_3(%arg0: i32) -> (i32, i32) {
    %c0_i32 = arith.constant 0 : i32
    %c0_i32_0 = arith.constant 0 : i32
    return %arg0, %c0_i32 : i32, i32
  }
}

module attributes {stable_mosaic.version = 11 : i64} {
  func.func @_mm_bias_act_kernel(%arg0: i32, %arg1: memref<8x64xbf16, #tpu.memory_space<vmem>>, %arg2: memref<64x128xbf16, #tpu.memory_space<vmem>>, %arg3: memref<1x128xf32, #tpu.memory_space<vmem>>, %arg4: memref<8x128xf32, #tpu.memory_space<vmem>>) attributes {dimension_semantics = [#tpu.dimension_semantics<parallel>], iteration_bounds = array<i64: 1>, scalar_prefetch = 0 : i64, scratch_operands = 0 : i64, tpu.core_type = #tpu.core_type<tc>, window_params = [{transform_indices = @transform_0, window_bounds = array<i64: 8, 64>}, {pipeline_mode = #tpu.pipeline_mode<synchronous>, transform_indices = @transform_1, window_bounds = array<i64: 64, 128>}, {pipeline_mode = #tpu.pipeline_mode<synchronous>, transform_indices = @transform_2, window_bounds = array<i64: 1, 128>}, {transform_indices = @transform_3, window_bounds = array<i64: 8, 128>}]} {
    %c0 = arith.constant 0 : index
    %c0_0 = arith.constant 0 : index
    %0 = vector.load %arg1[%c0, %c0_0] : memref<8x64xbf16, #tpu.memory_space<vmem>>, vector<8x64xbf16>
    %c0_1 = arith.constant 0 : index
    %c0_2 = arith.constant 0 : index
    %1 = vector.load %arg2[%c0_1, %c0_2] : memref<64x128xbf16, #tpu.memory_space<vmem>>, vector<64x128xbf16>
    %cst = arith.constant dense<0.000000e+00> : vector<8x128xf32>
    %2 = tpu.matmul %0, %1, %cst {dimension_numbers = #tpu.dot_dimension_numbers<[1], [0], [0], [1], [0, 0, 1, 1], [], []>} : vector<8x64xbf16>, vector<64x128xbf16>, vector<8x128xf32> -> vector<8x128xf32>
    %c0_3 = arith.constant 0 : index
    %c0_4 = arith.constant 0 : index
    %3 = vector.load %arg3[%c0_3, %c0_4] : memref<1x128xf32, #tpu.memory_space<vmem>>, vector<1x128xf32>
    %4 = vector.broadcast %3 : vector<1x128xf32> to vector<8x128xf32>
    %5 = arith.addf %2, %4 : vector<8x128xf32>
    %cst_5 = arith.constant 0.000000e+00 : f32
    %6 = vector.broadcast %cst_5 : f32 to vector<8x128xf32>
    %7 = arith.maximumf %5, %6 : vector<8x128xf32>
    %c0_6 = arith.constant 0 : index
    %c0_7 = arith.constant 0 : index
    %8 = vector.load %arg4[%c0_6, %c0_7] : memref<8x128xf32, #tpu.memory_space<vmem>>, vector<8x128xf32>
    tpu.vector_store %arg4[%c0_6, %c0_7], %7 {strides = array<i32>} : memref<8x128xf32, #tpu.memory_space<vmem>>, vector<8x128xf32>,
    return
  }
  func.func @transform_0(%arg0: i32) -> (i32, i32) {
    %c0_i32 = arith.constant 0 : i32
    %c0_i32_0 = arith.constant 0 : i32
    return %arg0, %c0_i32 : i32, i32
  }
  func.func @transform_1(%arg0: i32) -> (i32, i32) {
    %c0_i32 = arith.constant 0 : i32
    %c0_i32_0 = arith.constant 0 : i32
    %c0_i32_1 = arith.constant 0 : i32
    return %c0_i32, %c0_i32_0 : i32, i32
  }
  func.func @transform_2(%arg0: i32) -> (i32, i32) {
    %c0_i32 = arith.constant 0 : i32
    %c0_i32_0 = arith.constant 0 : i32
    %c0_i32_1 = arith.constant 0 : i32
    return %c0_i32, %c0_i32_0 : i32, i32
  }
  func.func @transform_3(%arg0: i32) -> (i32, i32) {
    %c0_i32 = arith.constant 0 : i32
    %c0_i32_0 = arith.constant 0 : i32
    return %arg0, %c0_i32 : i32, i32
  }
}

module attributes {stable_mosaic.version = 11 : i64} {
  func.func @_mm_bias_act_kernel(%arg0: i32, %arg1: memref<24x32xbf16, #tpu.memory_space<vmem>>, %arg2: memref<32x128xbf16, #tpu.memory_space<vmem>>, %arg3: memref<1x128xf32, #tpu.memory_space<vmem>>, %arg4: memref<24x128xf32, #tpu.memory_space<vmem>>) attributes {dimension_semantics = [#tpu.dimension_semantics<parallel>], iteration_bounds = array<i64: 1>, scalar_prefetch = 0 : i64, scratch_operands = 0 : i64, tpu.core_type = #tpu.core_type<tc>, window_params = [{transform_indices = @transform_0, window_bounds = array<i64: 24, 32>}, {pipeline_mode = #tpu.pipeline_mode<synchronous>, transform_indices = @transform_1, window_bounds = array<i64: 32, 128>}, {pipeline_mode = #tpu.pipeline_mode<synchronous>, transform_indices = @transform_2, window_bounds = array<i64: 1, 128>}, {transform_indices = @transform_3, window_bounds = array<i64: 24, 128>}]} {
    %c0 = arith.constant 0 : index
    %c0_0 = arith.constant 0 : index
    %0 = vector.load %arg1[%c0, %c0_0] : memref<24x32xbf16, #tpu.memory_space<vmem>>, vector<24x32xbf16>
    %c0_1 = arith.constant 0 : index
    %c0_2 = arith.constant 0 : index
    %1 = vector.load %arg2[%c0_1, %c0_2] : memref<32x128xbf16, #tpu.memory_space<vmem>>, vector<32x128xbf16>
    %cst = arith.constant dense<0.000000e+00> : vector<24x128xf32>
    %2 = tpu.matmul %0, %1, %cst {dimension_numbers = #tpu.dot_dimension_numbers<[1], [0], [0], [1], [0, 0, 1, 1], [], []>} : vector<24x32xbf16>, vector<32x128xbf16>, vector<24x128xf32> -> vector<24x128xf32>
    %c0_3 = arith.constant 0 : index
    %c0_4 = arith.constant 0 : index
    %3 = vector.load %arg3[%c0_3, %c0_4] : memref<1x128xf32, #tpu.memory_space<vmem>>, vector<1x128xf32>
    %4 = vector.broadcast %3 : vector<1x128xf32> to vector<24x128xf32>
    %5 = arith.addf %2, %4 : vector<24x128xf32>
    %cst_5 = arith.constant 0.000000e+00 : f32
    %6 = vector.broadcast %cst_5 : f32 to vector<24x128xf32>
    %7 = arith.maximumf %5, %6 : vector<24x128xf32>
    %c0_6 = arith.constant 0 : index
    %c0_7 = arith.constant 0 : index
    %8 = vector.load %arg4[%c0_6, %c0_7] : memref<24x128xf32, #tpu.memory_space<vmem>>, vector<24x128xf32>
    tpu.vector_store %arg4[%c0_6, %c0_7], %7 {strides = array<i32>} : memref<24x128xf32, #tpu.memory_space<vmem>>, vector<24x128xf32>,
    return
  }
  func.func @transform_0(%arg0: i32) -> (i32, i32) {
    %c0_i32 = arith.constant 0 : i32
    %c0_i32_0 = arith.constant 0 : i32
    return %arg0, %c0_i32 : i32, i32
  }
  func.func @transform_1(%arg0: i32) -> (i32, i32) {
    %c0_i32 = arith.constant 0 : i32
    %c0_i32_0 = arith.constant 0 : i32
    %c0_i32_1 = arith.constant 0 : i32
    return %c0_i32, %c0_i32_0 : i32, i32
  }
  func.func @transform_2(%arg0: i32) -> (i32, i32) {
    %c0_i32 = arith.constant 0 : i32
    %c0_i32_0 = arith.constant 0 : i32
    %c0_i32_1 = arith.constant 0 : i32
    return %c0_i32, %c0_i32_0 : i32, i32
  }
  func.func @transform_3(%arg0: i32) -> (i32, i32) {
    %c0_i32 = arith.constant 0 : i32
    %c0_i32_0 = arith.constant 0 : i32
    return %arg0, %c0_i32 : i32, i32
  }
}

module attributes {stable_mosaic.version = 11 : i64} {
  func.func @_mm_bias_act_kernel(%arg0: i32, %arg1: memref<88x16xbf16, #tpu.memory_space<vmem>>, %arg2: memref<16x128xbf16, #tpu.memory_space<vmem>>, %arg3: memref<1x128xf32, #tpu.memory_space<vmem>>, %arg4: memref<88x128xf32, #tpu.memory_space<vmem>>) attributes {dimension_semantics = [#tpu.dimension_semantics<parallel>], iteration_bounds = array<i64: 1>, scalar_prefetch = 0 : i64, scratch_operands = 0 : i64, tpu.core_type = #tpu.core_type<tc>, window_params = [{transform_indices = @transform_0, window_bounds = array<i64: 88, 16>}, {pipeline_mode = #tpu.pipeline_mode<synchronous>, transform_indices = @transform_1, window_bounds = array<i64: 16, 128>}, {pipeline_mode = #tpu.pipeline_mode<synchronous>, transform_indices = @transform_2, window_bounds = array<i64: 1, 128>}, {transform_indices = @transform_3, window_bounds = array<i64: 88, 128>}]} {
    %c0 = arith.constant 0 : index
    %c0_0 = arith.constant 0 : index
    %0 = vector.load %arg1[%c0, %c0_0] : memref<88x16xbf16, #tpu.memory_space<vmem>>, vector<88x16xbf16>
    %c0_1 = arith.constant 0 : index
    %c0_2 = arith.constant 0 : index
    %1 = vector.load %arg2[%c0_1, %c0_2] : memref<16x128xbf16, #tpu.memory_space<vmem>>, vector<16x128xbf16>
    %cst = arith.constant dense<0.000000e+00> : vector<88x128xf32>
    %2 = tpu.matmul %0, %1, %cst {dimension_numbers = #tpu.dot_dimension_numbers<[1], [0], [0], [1], [0, 0, 1, 1], [], []>} : vector<88x16xbf16>, vector<16x128xbf16>, vector<88x128xf32> -> vector<88x128xf32>
    %c0_3 = arith.constant 0 : index
    %c0_4 = arith.constant 0 : index
    %3 = vector.load %arg3[%c0_3, %c0_4] : memref<1x128xf32, #tpu.memory_space<vmem>>, vector<1x128xf32>
    %4 = vector.broadcast %3 : vector<1x128xf32> to vector<88x128xf32>
    %5 = arith.addf %2, %4 : vector<88x128xf32>
    %c0_5 = arith.constant 0 : index
    %c0_6 = arith.constant 0 : index
    %6 = vector.load %arg4[%c0_5, %c0_6] : memref<88x128xf32, #tpu.memory_space<vmem>>, vector<88x128xf32>
    tpu.vector_store %arg4[%c0_5, %c0_6], %5 {strides = array<i32>} : memref<88x128xf32, #tpu.memory_space<vmem>>, vector<88x128xf32>,
    return
  }
  func.func @transform_0(%arg0: i32) -> (i32, i32) {
    %c0_i32 = arith.constant 0 : i32
    %c0_i32_0 = arith.constant 0 : i32
    return %arg0, %c0_i32 : i32, i32
  }
  func.func @transform_1(%arg0: i32) -> (i32, i32) {
    %c0_i32 = arith.constant 0 : i32
    %c0_i32_0 = arith.constant 0 : i32
    %c0_i32_1 = arith.constant 0 : i32
    return %c0_i32, %c0_i32_0 : i32, i32
  }
  func.func @transform_2(%arg0: i32) -> (i32, i32) {
    %c0_i32 = arith.constant 0 : i32
    %c0_i32_0 = arith.constant 0 : i32
    %c0_i32_1 = arith.constant 0 : i32
    return %c0_i32, %c0_i32_0 : i32, i32
  }
  func.func @transform_3(%arg0: i32) -> (i32, i32) {
    %c0_i32 = arith.constant 0 : i32
    %c0_i32_0 = arith.constant 0 : i32
    return %arg0, %c0_i32 : i32, i32
  }
}

</mosaic_0001>

<bundles_post_ra>
// kernel: demucs_forward.16
= control target key start
LH: loop header
LB: loop body
LE: loop exit
PB: predicated region body
PF: predicated region fallthrough
CT: control target
= control target key end

     0   :  { %s150_s0 = inlined_call_operand.vmem [shape: f32[72,128], index: 0, kind: input, shape index: {}]   ;;  %s151_s1 = inlined_call_operand.vmem [shape: f32[1,128], index: 1, kind: input, shape index: {}]   ;;  %s152_s2 = inlined_call_operand.vmem [shape: f32[1,128], index: 2, kind: input, shape index: {}]   ;;  %s153_s3 = inlined_call_operand.vmem [shape: f32[72,128], index: 3, kind: output, shape index: {}]  }
   0x1   :  { %v14_v0 = vld [vmem:[%s150_s0] sm:$0xff]  ;;  %v15_v4 = vld [vmem:[%s150_s0 + $0x8] sm:$0xff]  ;;  %v16_v5 = vld [vmem:[%s150_s0 + $0x10] sm:$0xff] }
   0x2   :  { %v68_v1 = vld [vmem:[%s151_s1] ss:$0 sm:$0xff]  ;;  %v17_v6 = vld [vmem:[%s150_s0 + $0x18] sm:$0xff]  ;;  %v19_v11 = vld [vmem:[%s150_s0 + $0x28] sm:$0xff] }
   0x3   :  { %v69_v2 = vld [vmem:[%s152_s2] ss:$0 sm:$0xff]  ;;  %v30_v3 = vmul.f32 %v68_v1, %v14_v0  ;;  %v31_v7 = vmul.f32 %v68_v1, %v15_v4  ;;  %v32_v8 = vmul.f32 %v68_v1, %v16_v5  ;;  %v33_v9 = vmul.f32 %v68_v1, %v17_v6  ;;  %v20_v12 = vld [vmem:[%s150_s0 + $0x30] sm:$0xff]  ;;  %v21_v17 = vld [vmem:[%s150_s0 + $0x38] sm:$0xff] }
   0x4   :  { %v18_v10 = vld [vmem:[%s150_s0 + $0x20] sm:$0xff]  ;;  %v35_v15 = vmul.f32 %v68_v1, %v19_v11  ;;  %v36_v16 = vmul.f32 %v68_v1, %v20_v12  ;;  %v37_v22 = vmul.f32 %v68_v1, %v21_v17 }
   0x5   :  { %v46_v13 = vadd.f32 %v69_v2, %v30_v3  ;;  %v34_v14 = vmul.f32 %v68_v1, %v18_v10  ;;  %v22_v18 = vld [vmem:[%s150_s0 + $0x40] sm:$0xff]  ;;  %v47_v19 = vadd.f32 %v69_v2, %v31_v7  ;;  %v48_v20 = vadd.f32 %v69_v2, %v32_v8 }
   0x6   :  { %v49_v21 = vadd.f32 %v69_v2, %v33_v9  ;;  %v51_v24 = vadd.f32 %v69_v2, %v35_v15  ;;  %v52_v25 = vadd.f32 %v69_v2, %v36_v16  ;;  %v38_v26 = vmul.f32 %v68_v1, %v22_v18 }
   0x7   :  { %55 = vst [vmem:[%s153_s3] sm:$0xff] %v46_v13  ;;  %v50_v23 = vadd.f32 %v69_v2, %v34_v14  ;;  %56 = vst [vmem:[%s153_s3 + $0x8] sm:$0xff] %v47_v19  ;;  %v53_v27 = vadd.f32 %v69_v2, %v37_v22 }
   0x8   :  { %57 = vst [vmem:[%s153_s3 + $0x10] sm:$0xff] %v48_v20  ;;  %58 = vst [vmem:[%s153_s3 + $0x18] sm:$0xff] %v49_v21  ;;  %v54_v28 = vadd.f32 %v69_v2, %v38_v26 }
   0x9   :  { %59 = vst [vmem:[%s153_s3 + $0x20] sm:$0xff] %v50_v23  ;;  %60 = vst [vmem:[%s153_s3 + $0x28] sm:$0xff] %v51_v24 }
   0xa   :  { %61 = vst [vmem:[%s153_s3 + $0x30] sm:$0xff] %v52_v25  ;;  %62 = vst [vmem:[%s153_s3 + $0x38] sm:$0xff] %v53_v27 }
   0xb   :  { %63 = vst [vmem:[%s153_s3 + $0x40] sm:$0xff] %v54_v28 }

// kernel: demucs_forward.15
= control target key start
LH: loop header
LB: loop body
LE: loop exit
PB: predicated region body
PF: predicated region fallthrough
CT: control target
= control target key end

     0   :  { %vm73_vm0 = vcmask 1043456   ;;  %v323_v0 = vmov 0.0   ;;  %vm324_vm1 = vmmov 0   ;;  %vm57_vm2 = vcmask 64512   ;;  %s414_s1 = inlined_call_operand.vmem [shape: bf16[8,128], index: 1, kind: input, shape index: {}]   ;;  %s415_s0 = inlined_call_operand.vmem [shape: bf16[72,8], index: 0, kind: input, shape index: {}]   ;;  %s416_s2 = inlined_call_operand.vmem [shape: f32[1,128], index: 2, kind: input, shape index: {}]   ;;  %s417_s3 = inlined_call_operand.vmem [shape: f32[72,128], index: 3, kind: output, shape index: {0}]   ;;  %s418_s4 = inlined_call_operand.vmem [shape: f32[8,128], index: 4, kind: output, shape index: {1}]  }
   0x1   :  { %292 = vmatprep.subr.bf16.mxu0 %v323_v0  ;;  %v26_v1 = vld [vmem:[%s414_s1] sm:$0xf]  ;;  %294 = vmatprep.mubr.msk.bf16.mxu0 %vm324_vm1, %v323_v0  ;;  %v320_v4 = vld [vmem:[%s415_s0 + $0x18] sm:$0xff]   ;;  %v319_v5 = vld [vmem:[%s415_s0 + $0x8] sm:$0xff]   ;;  %v168_v23 = vlaneseq  ;;  %vm261_vm4 = vcmask 1040384   ;;  %vm263_vm5 = vcmask 1041408  }
   0x2   :  { %v75_v2 = vsel %vm73_vm0, %v26_v1, 0  ;;  %v318_v3 = vld [vmem:[%s415_s0] sm:$0xff]   ;;  %314 = vmatprep.subr.bf16.mxu1 %v323_v0  ;;  %306 = vmatprep.mubr.msk.bf16.mxu1 %vm324_vm1, %v323_v0  ;;  %v321_v7 = vld [vmem:[%s415_s0 + $0x10] sm:$0xff]  }
   0x3   :  { %293 = vmatpush3.bf16.msra.mxu0 %v75_v2  ;;  %315 = vmatpush3.bf16.msra.mxu1 %v75_v2  ;;  %v322_v6 = vld [vmem:[%s415_s0 + $0x20] ss:$0 sps:$4 sm:$0xff]   ;;  %v169_v31 = vshrl.u32 %v168_v23, 7 }
   0x4   :  { %v274_v8 = vld [vmem:[%s416_s2] ss:$0 sm:$0xff] }
   0x5   :  { %v177_v39 = vadd.s32 64, %v169_v31 }
   0x6   :  { %295 = vmatmul.mubr.msk.bf16.vlgmr.msra.gmra.mxu0 %vm57_vm2, %v318_v3  ;;  %307 = vmatmul.mubr.msk.bf16.vlgmr.msra.gmra.mxu1 %vm57_vm2, %v320_v4 }
   0x7   :  { %298 = vmatprep.mubr.msk.bf16.mxu0 %vm324_vm1, %v323_v0  ;;  %310 = vmatprep.mubr.msk.bf16.mxu1 %vm324_vm1, %v323_v0  ;;  %vm196_vm3 = vcmp.lt.s32.totalorder %v177_v39, 66 }
   0x8   :  { %v285_v58 = vsel %vm196_vm3, 1.0, %v323_v0 }
   0xe   :  { %299 = vmatmul.mubr.msk.bf16.gmra.mxu0 %vm57_vm2, %v319_v5  ;;  %311 = vmatmul.mubr.msk.bf16.gmra.mxu1 %vm57_vm2, %v322_v6 }
   0xf   :  { %302 = vmatprep.mubr.msk.bf16.mxu0 %vm324_vm1, %v323_v0 }
  0x16   :  { %303 = vmatmul.mubr.msk.bf16.gmra.mxu0 %vm57_vm2, %v321_v7 }
  0xc6   :  { %v111_v9 = vpop.f32.mrf.mxu0  ;;  %v135_v10 = vpop.f32.mrf.mxu1 }
  0xc7   :  { %v112_v11 = vadd.f32 %v274_v8, %v111_v9  ;;  %v136_v12 = vadd.f32 %v274_v8, %v135_v10 }
  0xc8   :  { %v296_v13 = vpop.f32.mrf.mxu0  ;;  %v308_v14 = vpop.f32.mrf.mxu1 }
  0xc9   :  { %v149_v15 = vmax.f32 %v112_v11, 0.0  ;;  %v155_v16 = vmax.f32 %v136_v12, 0.0 }
  0xca   :  { %v114_v17 = vpop.f32.mrf.mxu0  ;;  %v138_v18 = vpop.f32.mrf.mxu1 }
  0xcb   :  { %158 = vst [vmem:[%s417_s3] sm:$0xff] %v149_v15  ;;  %v115_v19 = vadd.f32 %v274_v8, %v114_v17  ;;  %164 = vst [vmem:[%s417_s3 + $0x30] sm:$0xff] %v155_v16  ;;  %v139_v20 = vadd.f32 %v274_v8, %v138_v18  ;;  %v238_v44 = vmul.f32 %v149_v15, %v149_v15 }
  0xcc   :  { %v297_v21 = vpop.f32.mrf.mxu0  ;;  %v309_v22 = vpop.f32.mrf.mxu1  ;;  %v244_v4 = vmul.f32 %v155_v16, %v155_v16 }
  0xcd   :  { %v150_v24 = vmax.f32 %v115_v19, 0.0  ;;  %v156_v25 = vmax.f32 %v139_v20, 0.0 }
  0xce   :  { %v119_v26 = vpop.f32.mrf.mxu0  ;;  %v143_v27 = vpop.f32.mrf.mxu1 }
  0xcf   :  { %159 = vst [vmem:[%s417_s3 + $0x8] sm:$0xff] %v150_v24  ;;  %v120_v28 = vadd.f32 %v274_v8, %v119_v26  ;;  %165 = vst [vmem:[%s417_s3 + $0x38] sm:$0xff] %v156_v25  ;;  %v144_v30 = vadd.f32 %v274_v8, %v143_v27  ;;  %v239_v41 = vmul.f32 %v150_v24, %v150_v24 }
  0xd0   :  { %v300_v29 = vpop.f32.mrf.mxu0  ;;  %v312_v32 = vpop.f32.mrf.mxu1  ;;  %v224_v45 = vadd.f32 %v150_v24, %v149_v15  ;;  %v245_v7 = vmul.f32 %v156_v25, %v156_v25 }
  0xd1   :  { %v151_v33 = vmax.f32 %v120_v28, 0.0  ;;  %v157_v35 = vmax.f32 %v144_v30, 0.0  ;;  %v247_v49 = vadd.f32 %v239_v41, %v238_v44 }
  0xd2   :  { %v122_v34 = vpop.f32.mrf.mxu0  ;;  %v146_v36 = vpop.f32.mrf.mxu1 }
  0xd3   :  { %160 = vst [vmem:[%s417_s3 + $0x10] sm:$0xff] %v151_v33  ;;  %v123_v37 = vadd.f32 %v274_v8, %v122_v34  ;;  %166 = vst [vmem:[%s417_s3 + $0x40] sm:$0xff] %v157_v35  ;;  %v240_v46 = vmul.f32 %v151_v33, %v151_v33  ;;  %v225_v50 = vadd.f32 %v224_v45, %v151_v33 }
  0xd4   :  { %v301_v38 = vpop.f32.mrf.mxu0  ;;  %v313_v40 = vpop.f32.mrf.mxu1  ;;  %v223_v1 = vmul.f32 %v285_v58, %v157_v35 }
  0xd5   :  { %v152_v42 = vmax.f32 %v123_v37, 0.0  ;;  %v248_v54 = vadd.f32 %v247_v49, %v240_v46 }
  0xd6   :  { %v127_v43 = vpop.f32.mrf.mxu0  ;;  %v246_v9 = vmul.f32 %v223_v1, %v223_v1 }
  0xd7   :  { %161 = vst [vmem:[%s417_s3 + $0x18] sm:$0xff] %v152_v42  ;;  %v128_v47 = vadd.f32 %v274_v8, %v127_v43  ;;  %v241_v51 = vmul.f32 %v152_v42, %v152_v42  ;;  %v226_v55 = vadd.f32 %v225_v50, %v152_v42 }
  0xd8   :  { %v304_v48 = vpop.f32.mrf.mxu0 }
  0xd9   :  { %v153_v52 = vmax.f32 %v128_v47, 0.0  ;;  %v249_v60 = vadd.f32 %v248_v54, %v241_v51 }
  0xda   :  { %v130_v53 = vpop.f32.mrf.mxu0 }
  0xdb   :  { %162 = vst [vmem:[%s417_s3 + $0x20] sm:$0xff] %v153_v52  ;;  %v242_v56 = vmul.f32 %v153_v52, %v153_v52  ;;  %v131_v57 = vadd.f32 %v274_v8, %v130_v53  ;;  %v227_v61 = vadd.f32 %v226_v55, %v153_v52 }
  0xdc   :  { %v305_v59 = vpop.f32.mrf.mxu0 }
  0xdd   :  { %v154_v62 = vmax.f32 %v131_v57, 0.0  ;;  %v250_v63 = vadd.f32 %v249_v60, %v242_v56 }
  0xdf   :  { %163 = vst [vmem:[%s417_s3 + $0x28] sm:$0xff] %v154_v62  ;;  %v228_v2 = vadd.f32 %v227_v61, %v154_v62  ;;  %v243_v3 = vmul.f32 %v154_v62, %v154_v62 }
  0xe1   :  { %v229_v5 = vadd.f32 %v228_v2, %v155_v16  ;;  %v251_v6 = vadd.f32 %v250_v63, %v243_v3 }
  0xe3   :  { %v230_v8 = vadd.f32 %v229_v5, %v156_v25  ;;  %v252_v10 = vadd.f32 %v251_v6, %v244_v4 }
  0xe5   :  { %v231_v0 = vadd.f32 %v230_v8, %v223_v1  ;;  %v253_v11 = vadd.f32 %v252_v10, %v245_v7 }
  0xe7   :  { %v232_v12 = vrot.slane %v231_v0, 4  ;;  %v254_v13 = vadd.f32 %v253_v11, %v246_v9 }
  0xe9   :  { %v233_v14 = vadd.f32 %v232_v12, %v231_v0  ;;  %v255_v15 = vrot.slane %v254_v13, 4 }
  0xeb   :  { %v234_v17 = vrot.slane %v233_v14, 2  ;;  %v256_v18 = vadd.f32 %v255_v15, %v254_v13 }
  0xed   :  { %v235_v19 = vadd.f32 %v234_v17, %v233_v14  ;;  %v257_v20 = vrot.slane %v256_v18, 2 }
  0xef   :  { %v236_v21 = vrot.slane %v235_v19, 1  ;;  %v258_v22 = vadd.f32 %v257_v20, %v256_v18 }
  0xf1   :  { %v259_v23 = vrot.slane %v258_v22, 1  ;;  %v237_v16 = vadd.f32 %v236_v21, %v235_v19 }
  0xf3   :  { %v260_v24 = vadd.f32 %v259_v23, %v258_v22 }
  0xf5   :  { %v262_v26 = vsel %vm261_vm4, %v237_v16, %v260_v24 }
  0xf6   :  { %v264_v25 = vsel %vm263_vm5, %v262_v26, 0.0 }
  0xf7   :  { %265 = vst [vmem:[%s418_s4] sm:$0xff] %v264_v25 }

// kernel: demucs_forward.18
= control target key start
LH: loop header
LB: loop body
LE: loop exit
PB: predicated region body
PF: predicated region fallthrough
CT: control target
= control target key end

     0   :  { %s90_s0 = inlined_call_operand.vmem [shape: f32[24,128], index: 0, kind: input, shape index: {}]   ;;  %s91_s1 = inlined_call_operand.vmem [shape: f32[1,128], index: 1, kind: input, shape index: {}]   ;;  %s92_s2 = inlined_call_operand.vmem [shape: f32[1,128], index: 2, kind: input, shape index: {}]   ;;  %s93_s3 = inlined_call_operand.vmem [shape: f32[24,128], index: 3, kind: output, shape index: {}]  }
   0x1   :  { %v14_v0 = vld [vmem:[%s90_s0] sm:$0xff]  ;;  %v15_v4 = vld [vmem:[%s90_s0 + $0x8] sm:$0xff]  ;;  %v16_v5 = vld [vmem:[%s90_s0 + $0x10] sm:$0xff] }
   0x2   :  { %v44_v1 = vld [vmem:[%s91_s1] ss:$0 sm:$0xff] }
   0x3   :  { %v45_v2 = vld [vmem:[%s92_s2] ss:$0 sm:$0xff]  ;;  %v24_v3 = vmul.f32 %v44_v1, %v14_v0  ;;  %v25_v6 = vmul.f32 %v44_v1, %v15_v4  ;;  %v26_v7 = vmul.f32 %v44_v1, %v16_v5 }
   0x5   :  { %v34_v8 = vadd.f32 %v45_v2, %v24_v3  ;;  %v35_v9 = vadd.f32 %v45_v2, %v25_v6  ;;  %v36_v10 = vadd.f32 %v45_v2, %v26_v7 }
   0x7   :  { %37 = vst [vmem:[%s93_s3] sm:$0xff] %v34_v8  ;;  %38 = vst [vmem:[%s93_s3 + $0x8] sm:$0xff] %v35_v9 }
   0x8   :  { %39 = vst [vmem:[%s93_s3 + $0x10] sm:$0xff] %v36_v10 }

// kernel: demucs_forward.17
= control target key start
LH: loop header
LB: loop body
LE: loop exit
PB: predicated region body
PF: predicated region fallthrough
CT: control target
= control target key end

     0   :  { %vm67_vm0 = vcmask 523264   ;;  %v129_v6 = vlaneseq  ;;  %v216_v17 = vmov 0.0   ;;  %vm168_vm2 = vcmask 1040384   ;;  %s275_s1 = inlined_call_operand.vmem [shape: bf16[64,128], index: 1, kind: input, shape index: {}]   ;;  %s276_s0 = inlined_call_operand.vmem [shape: bf16[24,64], index: 0, kind: input, shape index: {}]   ;;  %s277_s2 = inlined_call_operand.vmem [shape: f32[1,128], index: 2, kind: input, shape index: {}]   ;;  %s278_s3 = inlined_call_operand.vmem [shape: f32[24,128], index: 3, kind: output, shape index: {0}]   ;;  %s279_s4 = inlined_call_operand.vmem [shape: f32[8,128], index: 4, kind: output, shape index: {1}]  }
   0x1   :  { %v210_v0 = vld [vmem:[%s275_s1 + $0x18] sm:$0xff]   ;;  %v211_v1 = vld [vmem:[%s275_s1 + $0x10] sm:$0xff]   ;;  %v212_v2 = vld [vmem:[%s275_s1 + $0x8] sm:$0xff]   ;;  %vm170_vm3 = vcmask 1041408  }
   0x2   :  { %197 = vmatprep.subr.bf16.mxu0 %v210_v0  ;;  %v214_v3 = vld [vmem:[%s276_s0] sm:$0xff]   ;;  %v215_v5 = vld [vmem:[%s276_s0 + $0x8] ss:$0 sps:$4 sm:$0xff]   ;;  %v130_v7 = vshrl.u32 %v129_v6, 7 }
   0x3   :  { %198 = vmatpush3.bf16.msra.mxu0 %v210_v0  ;;  %205 = vmatprep.mubr.msk.bf16.mxu0 %vm67_vm0, %v214_v3  ;;  %v213_v4 = vld [vmem:[%s275_s1] sm:$0xff]  }
   0x4   :  { %199 = vmatprep.subr.bf16.mxu0 %v211_v1  ;;  %v181_v8 = vld [vmem:[%s277_s2] ss:$0 sm:$0xff]  ;;  %v132_v9 = vadd.s32 16, %v130_v7 }
   0x6   :  { %vm139_vm1 = vcmp.lt.s32.totalorder %v132_v9, 18 }
   0x7   :  { %200 = vmatpush3.bf16.msra.mxu0 %v211_v1  ;;  %v190_v18 = vsel %vm139_vm1, 1.0, %v216_v17 }
   0x8   :  { %201 = vmatprep.subr.bf16.mxu0 %v212_v2 }
   0xb   :  { %202 = vmatpush3.bf16.msra.mxu0 %v212_v2 }
   0xc   :  { %203 = vmatprep.subr.bf16.mxu0 %v213_v4 }
   0xf   :  { %204 = vmatpush3.bf16.msra.mxu0 %v213_v4 }
  0x12   :  { %206 = vmatmul.mubr.msk.bf16.vlgmr.msra.gmra.mxu0 %vm67_vm0, %v215_v5 }
  0xd2   :  { %v207_v10 = vpop.f32.mrf.mxu0 }
  0xd3   :  { %v117_v11 = vadd.f32 %v207_v10, %v181_v8 }
  0xd4   :  { %v108_v12 = vpop.f32.mrf.mxu0 }
  0xd5   :  { %v124_v13 = vmax.f32 %v117_v11, 0.0  ;;  %v109_v14 = vadd.f32 %v181_v8, %v108_v12 }
  0xd6   :  { %v208_v15 = vpop.f32.mrf.mxu0 }
  0xd7   :  { %127 = vst [vmem:[%s278_s3 + $0x10] sm:$0xff] %v124_v13  ;;  %v122_v16 = vmax.f32 %v109_v14, 0.0  ;;  %v148_v21 = vmul.f32 %v190_v18, %v124_v13 }
  0xd8   :  { %v111_v19 = vpop.f32.mrf.mxu0 }
  0xd9   :  { %125 = vst [vmem:[%s278_s3] sm:$0xff] %v122_v16  ;;  %v112_v20 = vadd.f32 %v181_v8, %v111_v19  ;;  %v157_v23 = vmul.f32 %v122_v16, %v122_v16  ;;  %v159_v26 = vmul.f32 %v148_v21, %v148_v21 }
  0xdb   :  { %v123_v22 = vmax.f32 %v112_v20, 0.0 }
  0xdd   :  { %126 = vst [vmem:[%s278_s3 + $0x8] sm:$0xff] %v123_v22  ;;  %v149_v24 = vadd.f32 %v123_v22, %v122_v16  ;;  %v158_v25 = vmul.f32 %v123_v22, %v123_v22 }
  0xdf   :  { %v150_v27 = vadd.f32 %v149_v24, %v148_v21  ;;  %v160_v28 = vadd.f32 %v158_v25, %v157_v23 }
  0xe1   :  { %v151_v29 = vrot.slane %v150_v27, 4  ;;  %v161_v30 = vadd.f32 %v160_v28, %v159_v26 }
  0xe3   :  { %v152_v31 = vadd.f32 %v151_v29, %v150_v27  ;;  %v162_v32 = vrot.slane %v161_v30, 4 }
  0xe5   :  { %v153_v33 = vrot.slane %v152_v31, 2  ;;  %v163_v34 = vadd.f32 %v162_v32, %v161_v30 }
  0xe7   :  { %v154_v35 = vadd.f32 %v153_v33, %v152_v31  ;;  %v164_v36 = vrot.slane %v163_v34, 2 }
  0xe9   :  { %v155_v37 = vrot.slane %v154_v35, 1  ;;  %v165_v38 = vadd.f32 %v164_v36, %v163_v34 }
  0xeb   :  { %v166_v39 = vrot.slane %v165_v38, 1  ;;  %v156_v40 = vadd.f32 %v155_v37, %v154_v35 }
  0xed   :  { %v167_v41 = vadd.f32 %v166_v39, %v165_v38 }
  0xef   :  { %v169_v42 = vsel %vm168_vm2, %v156_v40, %v167_v41 }
  0xf0   :  { %v171_v43 = vsel %vm170_vm3, %v169_v42, 0.0 }
  0xf1   :  { %172 = vst [vmem:[%s279_s4] sm:$0xff] %v171_v43 }

// kernel: demucs_forward.20
= control target key start
LH: loop header
LB: loop body
LE: loop exit
PB: predicated region body
PF: predicated region fallthrough
CT: control target
= control target key end

     0   :  { %s70_s0 = inlined_call_operand.vmem [shape: f32[8,128], index: 0, kind: input, shape index: {}]   ;;  %s71_s1 = inlined_call_operand.vmem [shape: f32[1,128], index: 1, kind: input, shape index: {}]   ;;  %s72_s2 = inlined_call_operand.vmem [shape: f32[1,128], index: 2, kind: input, shape index: {}]   ;;  %s73_s3 = inlined_call_operand.vmem [shape: f32[8,128], index: 3, kind: output, shape index: {}]  }
   0x1   :  { %v14_v0 = vld [vmem:[%s70_s0] sm:$0xff] }
   0x2   :  { %v36_v1 = vld [vmem:[%s71_s1] ss:$0 sm:$0xff] }
   0x3   :  { %v37_v2 = vld [vmem:[%s72_s2] ss:$0 sm:$0xff]  ;;  %v22_v3 = vmul.f32 %v36_v1, %v14_v0 }
   0x5   :  { %v30_v4 = vadd.f32 %v37_v2, %v22_v3 }
   0x7   :  { %31 = vst [vmem:[%s73_s3] sm:$0xff] %v30_v4 }

// kernel: demucs_forward.19
= control target key start
LH: loop header
LB: loop body
LE: loop exit
PB: predicated region body
PF: predicated region fallthrough
CT: control target
= control target key end

     0   :  { %v215_v0 = vmov 0.0   ;;  %vm216_vm0 = vmmov 0   ;;  %v132_v10 = vlaneseq  ;;  %vm153_vm2 = vcmask 1040384   ;;  %s278_s1 = inlined_call_operand.vmem [shape: bf16[128,128], index: 1, kind: input, shape index: {}]   ;;  %s279_s0 = inlined_call_operand.vmem [shape: bf16[8,128], index: 0, kind: input, shape index: {}]   ;;  %s280_s2 = inlined_call_operand.vmem [shape: f32[1,128], index: 2, kind: input, shape index: {}]   ;;  %s281_s3 = inlined_call_operand.vmem [shape: f32[8,128], index: 3, kind: output, shape index: {0}]   ;;  %s282_s4 = inlined_call_operand.vmem [shape: f32[8,128], index: 4, kind: output, shape index: {1}]  }
   0x1   :  { %185 = vmatprep.subr.bf16.mxu0 %v215_v0  ;;  %v207_v1 = vld [vmem:[%s278_s1 + $0x38] sm:$0xff]   ;;  %201 = vmatprep.mubr.msk.bf16.mxu0 %vm216_vm0, %v215_v0  ;;  %v208_v2 = vld [vmem:[%s278_s1 + $0x30] sm:$0xff]   ;;  %v209_v3 = vld [vmem:[%s278_s1 + $0x28] sm:$0xff]   ;;  %vm155_vm3 = vcmask 1041408  }
   0x2   :  { %186 = vmatpush3.bf16.msra.mxu0 %v207_v1  ;;  %v210_v4 = vld [vmem:[%s278_s1 + $0x20] sm:$0xff]   ;;  %v211_v5 = vld [vmem:[%s278_s1 + $0x18] sm:$0xff]   ;;  %v212_v6 = vld [vmem:[%s278_s1 + $0x10] sm:$0xff]   ;;  %v133_v11 = vshrl.u32 %v132_v10, 7 }
   0x3   :  { %187 = vmatprep.subr.bf16.mxu0 %v215_v0  ;;  %v213_v7 = vld [vmem:[%s278_s1 + $0x8] sm:$0xff]   ;;  %v214_v8 = vld [vmem:[%s278_s1] sm:$0xff]  }
   0x4   :  { %v17_v9 = vld [vmem:[%s279_s0] sm:$0xf]  ;;  %vm136_vm1 = vcmp.lt.s32.totalorder %v133_v11, 6 }
   0x5   :  { %v166_v12 = vld [vmem:[%s280_s2] ss:$0 sm:$0xff]  ;;  %v175_v15 = vsel %vm136_vm1, 1.0, %v215_v0 }
   0x6   :  { %188 = vmatpush3.bf16.msra.mxu0 %v208_v2 }
   0x7   :  { %189 = vmatprep.subr.bf16.mxu0 %v215_v0 }
   0xa   :  { %190 = vmatpush3.bf16.msra.mxu0 %v209_v3 }
   0xb   :  { %191 = vmatprep.subr.bf16.mxu0 %v215_v0 }
   0xe   :  { %192 = vmatpush3.bf16.msra.mxu0 %v210_v4 }
   0xf   :  { %193 = vmatprep.subr.bf16.mxu0 %v215_v0 }
  0x12   :  { %194 = vmatpush3.bf16.msra.mxu0 %v211_v5 }
  0x13   :  { %195 = vmatprep.subr.bf16.mxu0 %v215_v0 }
  0x16   :  { %196 = vmatpush3.bf16.msra.mxu0 %v212_v6 }
  0x17   :  { %197 = vmatprep.subr.bf16.mxu0 %v215_v0 }
  0x1a   :  { %198 = vmatpush3.bf16.msra.mxu0 %v213_v7 }
  0x1b   :  { %199 = vmatprep.subr.bf16.mxu0 %v215_v0 }
  0x1e   :  { %200 = vmatpush3.bf16.msra.mxu0 %v214_v8 }
  0x21   :  { %202 = vmatmul.mubr.bf16.vlgmr.msra.gmra.mxu0 %v17_v9 }
  0xe1   :  { %v123_v13 = vpop.f32.mrf.mxu0 }
  0xe2   :  { %v124_v14 = vadd.f32 %v166_v12, %v123_v13 }
  0xe3   :  { %v203_v16 = vpop.f32.mrf.mxu0 }
  0xe4   :  { %v129_v17 = vmax.f32 %v124_v14, 0.0 }
  0xe5   :  { %v126_v18 = vpop.f32.mrf.mxu0 }
  0xe6   :  { %130 = vst [vmem:[%s281_s3] sm:$0xff] %v129_v17  ;;  %v139_v19 = vmul.f32 %v175_v15, %v129_v17 }
  0xe7   :  { %v204_v20 = vpop.f32.mrf.mxu0 }
  0xe8   :  { %v140_v21 = vrot.slane %v139_v19, 4  ;;  %v146_v22 = vmul.f32 %v139_v19, %v139_v19 }
  0xea   :  { %v141_v23 = vadd.f32 %v140_v21, %v139_v19  ;;  %v147_v24 = vrot.slane %v146_v22, 4 }
  0xec   :  { %v142_v25 = vrot.slane %v141_v23, 2  ;;  %v148_v26 = vadd.f32 %v147_v24, %v146_v22 }
  0xee   :  { %v143_v27 = vadd.f32 %v142_v25, %v141_v23  ;;  %v149_v28 = vrot.slane %v148_v26, 2 }
  0xf0   :  { %v144_v29 = vrot.slane %v143_v27, 1  ;;  %v150_v30 = vadd.f32 %v149_v28, %v148_v26 }
  0xf2   :  { %v151_v31 = vrot.slane %v150_v30, 1  ;;  %v145_v32 = vadd.f32 %v144_v29, %v143_v27 }
  0xf4   :  { %v152_v33 = vadd.f32 %v151_v31, %v150_v30 }
  0xf6   :  { %v154_v34 = vsel %vm153_vm2, %v145_v32, %v152_v33 }
  0xf7   :  { %v156_v35 = vsel %vm155_vm3, %v154_v34, 0.0 }
  0xf8   :  { %157 = vst [vmem:[%s282_s4] sm:$0xff] %v156_v35 }

// kernel: tile.53
= control target key start
LH: loop header
LB: loop body
LE: loop exit
PB: predicated region body
PF: predicated region fallthrough
CT: control target
= control target key end

     0   :  { %s22_s0 = inlined_call_operand.vmem [shape: f32[32], index: 0, kind: input, shape index: {}]   ;;  %s23_s1 = inlined_call_operand.vmem [shape: f32[4,32], index: 1, kind: output, shape index: {}]  }
   0x1   :  { %v4_v0 = vld [vmem:[%s22_s0] ss:$0 sm:$0xff] }
   0x2   :  { %5 = vst [vmem:[%s23_s1] sm:$0xf] %v4_v0 }

// kernel: demucs_forward.21
= control target key start
LH: loop header
LB: loop body
LE: loop exit
PB: predicated region body
PF: predicated region fallthrough
CT: control target
= control target key end

     0   :  { %v203_v19 = vlaneseq  ;;  %v298_v27 = vmov 0.0   ;;  %vm224_vm1 = vcmask 1040384   ;;  %vm226_vm2 = vcmask 1041408   ;;  %s384_s1 = inlined_call_operand.vmem [shape: bf16[256,128], index: 1, kind: input, shape index: {}]   ;;  %s385_s0 = inlined_call_operand.vmem [shape: bf16[8,256], index: 0, kind: input, shape index: {}]   ;;  %s386_s2 = inlined_call_operand.vmem [shape: f32[1,128], index: 2, kind: input, shape index: {}]   ;;  %s387_s3 = inlined_call_operand.vmem [shape: f32[8,128], index: 3, kind: output, shape index: {0}]   ;;  %s388_s4 = inlined_call_operand.vmem [shape: f32[8,128], index: 4, kind: output, shape index: {1}]  }
   0x1   :  { %v280_v0 = vld [vmem:[%s384_s1 + $0x78] sm:$0xff]   ;;  %v282_v2 = vld [vmem:[%s384_s1 + $0x70] sm:$0xff]   ;;  %v284_v4 = vld [vmem:[%s384_s1 + $0x68] sm:$0xff]  }
   0x2   :  { %v281_v1 = vld [vmem:[%s384_s1 + $0x38] sm:$0xff]   ;;  %257 = vmatprep.subr.bf16.mxu0 %v280_v0  ;;  %v283_v3 = vld [vmem:[%s384_s1 + $0x30] sm:$0xff]   ;;  %v285_v5 = vld [vmem:[%s384_s1 + $0x28] sm:$0xff]   ;;  %v204_v20 = vshrl.u32 %v203_v19, 7 }
   0x3   :  { %258 = vmatpush3.bf16.msra.mxu0 %v281_v1  ;;  %v286_v6 = vld [vmem:[%s384_s1 + $0x60] sm:$0xff]   ;;  %v288_v8 = vld [vmem:[%s384_s1 + $0x58] sm:$0xff]   ;;  %v290_v10 = vld [vmem:[%s384_s1 + $0x50] sm:$0xff]  }
   0x4   :  { %259 = vmatprep.subr.bf16.mxu0 %v282_v2  ;;  %v287_v7 = vld [vmem:[%s384_s1 + $0x20] sm:$0xff]   ;;  %v289_v9 = vld [vmem:[%s384_s1 + $0x18] sm:$0xff]   ;;  %v291_v13 = vld [vmem:[%s384_s1 + $0x10] sm:$0xff]   ;;  %vm207_vm0 = vcmp.lt.s32.totalorder %v204_v20, 2 }
   0x5   :  { %v17_v11 = vld [vmem:[%s385_s0] sm:$0xff]  ;;  %v292_v14 = vld [vmem:[%s384_s1 + $0x48] sm:$0xff]   ;;  %v256_v28 = vsel %vm207_vm0, 1.0, %v298_v27 }
   0x6   :  { %v239_v12 = vcombine.high %v17_v11, %v17_v11  ;;  %v293_v15 = vld [vmem:[%s384_s1 + $0x8] sm:$0xff]   ;;  %v294_v16 = vld [vmem:[%s384_s1 + $0x40] sm:$0xff]   ;;  %v238_v18 = vcombine.low %v17_v11, %v17_v11 }
   0x7   :  { %260 = vmatpush3.bf16.msra.mxu0 %v283_v3  ;;  %v295_v17 = vld [vmem:[%s384_s1] sm:$0xff]  }
   0x8   :  { %261 = vmatprep.subr.bf16.mxu0 %v284_v4  ;;  %192 = vmatprep.mubr.bf16.mxu0 %v239_v12  ;;  %v237_v22 = vld [vmem:[%s386_s2] ss:$0 sm:$0xff] }
   0xb   :  { %262 = vmatpush3.bf16.msra.mxu0 %v285_v5 }
   0xc   :  { %263 = vmatprep.subr.bf16.mxu0 %v286_v6 }
   0xf   :  { %264 = vmatpush3.bf16.msra.mxu0 %v287_v7 }
  0x10   :  { %265 = vmatprep.subr.bf16.mxu0 %v288_v8 }
  0x13   :  { %266 = vmatpush3.bf16.msra.mxu0 %v289_v9 }
  0x14   :  { %267 = vmatprep.subr.bf16.mxu0 %v290_v10 }
  0x17   :  { %268 = vmatpush3.bf16.msra.mxu0 %v291_v13 }
  0x18   :  { %269 = vmatprep.subr.bf16.mxu0 %v292_v14 }
  0x1b   :  { %270 = vmatpush3.bf16.msra.mxu0 %v293_v15 }
  0x1c   :  { %271 = vmatprep.subr.bf16.mxu0 %v294_v16 }
  0x1f   :  { %272 = vmatpush3.bf16.msra.mxu0 %v295_v17 }
  0x22   :  { %193 = vmatmul.mubr.bf16.vlgmr.msra.gmra.mxu0 %v238_v18 }
  0xe2   :  { %v273_v21 = vpop.f32.mrf.mxu0 }
  0xe4   :  { %v274_v23 = vpop.f32.mrf.mxu0 }
  0xe5   :  { %v275_v24 = vadd.f32 %v274_v23, %v273_v21 }
  0xe6   :  { %v276_v25 = vpop.f32.mrf.mxu0 }
  0xe7   :  { %v195_v26 = vadd.f32 %v275_v24, %v237_v22 }
  0xe8   :  { %v277_v29 = vpop.f32.mrf.mxu0 }
  0xe9   :  { %v200_v30 = vmax.f32 %v195_v26, 0.0 }
  0xeb   :  { %201 = vst [vmem:[%s387_s3] sm:$0xff] %v200_v30  ;;  %v210_v31 = vmul.f32 %v256_v28, %v200_v30 }
  0xed   :  { %v211_v32 = vrot.slane %v210_v31, 4  ;;  %v217_v33 = vmul.f32 %v210_v31, %v210_v31 }
  0xef   :  { %v212_v34 = vadd.f32 %v211_v32, %v210_v31  ;;  %v218_v35 = vrot.slane %v217_v33, 4 }
  0xf1   :  { %v213_v36 = vrot.slane %v212_v34, 2  ;;  %v219_v37 = vadd.f32 %v218_v35, %v217_v33 }
  0xf3   :  { %v214_v38 = vadd.f32 %v213_v36, %v212_v34  ;;  %v220_v39 = vrot.slane %v219_v37, 2 }
  0xf5   :  { %v215_v40 = vrot.slane %v214_v38, 1  ;;  %v221_v41 = vadd.f32 %v220_v39, %v219_v37 }
  0xf7   :  { %v222_v42 = vrot.slane %v221_v41, 1  ;;  %v216_v43 = vadd.f32 %v215_v40, %v214_v38 }
  0xf9   :  { %v223_v44 = vadd.f32 %v222_v42, %v221_v41 }
  0xfb   :  { %v225_v45 = vsel %vm224_vm1, %v216_v43, %v223_v44 }
  0xfc   :  { %v227_v46 = vsel %vm226_vm2, %v225_v45, 0.0 }
  0xfd   :  { %228 = vst [vmem:[%s388_s4] sm:$0xff] %v227_v46 }

// kernel: tile.69
= control target key start
LH: loop header
LB: loop body
LE: loop exit
PB: predicated region body
PF: predicated region fallthrough
CT: control target
= control target key end

     0   :  { %vm8_vm0 = vcmask 130048   ;;  %s40_s8 = smov 16   ;;  %s41_s9 = smov 32   ;;  %vm14_vm1 = vcmask 523648   ;;  %vm20_vm2 = vcmask 392448   ;;  %vm26_vm3 = vcmask 261248   ;;  %s58_s0 = inlined_call_operand.vmem [shape: f32[4,16], index: 0, kind: input, shape index: {}]   ;;  %s59_s1 = inlined_call_operand.vmem [shape: f32[64], index: 1, kind: output, shape index: {}]  }
   0x1   :  { %v5_v0 = vld [vmem:[%s58_s0] sm:$0xf]  ;;  %s39_s0 = smov 48  }
   0x2   :  { %6 = vst [vmem:[#allocation1] sm:$0xf] %v5_v0 }
   0x9   :  { %v11_v1 = vld [vmem:[#allocation1 + $0x3] sm:$0x1]   ;;  %v23_v2 = vld [vmem:[#allocation1 + $0x1] sm:$0x1]   ;;  %v7_v3 = vld [vmem:[#allocation1] sm:$0x1]  }
   0xa   :  { %12 = vrot.lane.b32.xlu0 %v11_v1, %s39_s0  ;;  %24 = vrot.lane.b32.xlu1 %v23_v2, %s40_s8  ;;  %v17_v4 = vld [vmem:[#allocation1 + $0x2] sm:$0x1]   ;;  %9 = vst.msk [vmem:[#allocation0] sm:$0x1] %vm8_vm0, %v7_v3  }
   0xe   :  { %18 = vrot.lane.b32.xlu0 %v17_v4, %s41_s9 }
  0x7c   :  { %v13_v5 = vpop.permute.xlu0 %12   ;;  %v25_v6 = vpop.permute.xlu1 %24  }
  0x7d   :  { %15 = vst.msk [vmem:[#allocation0] sm:$0x1] %vm14_vm1, %v13_v5  }
  0x80   :  { %v19_v7 = vpop.permute.xlu0 %18  }
  0x81   :  { %21 = vst.msk [vmem:[#allocation0] sm:$0x1] %vm20_vm2, %v19_v7  }
  0x82   :  { %27 = vst.msk [vmem:[#allocation0] sm:$0x1] %vm26_vm3, %v25_v6  }
  0x89   :  { %v32_v8 = vld [vmem:[#allocation0] sm:$0x1] }
  0x8a   :  { %35 = vst [vmem:[%s59_s1] sm:$0x1] %v32_v8 }

// kernel: tile.68
= control target key start
LH: loop header
LB: loop body
LE: loop exit
PB: predicated region body
PF: predicated region fallthrough
CT: control target
= control target key end

     0   :  { %s22_s0 = inlined_call_operand.vmem [shape: f32[16], index: 0, kind: input, shape index: {}]   ;;  %s23_s1 = inlined_call_operand.vmem [shape: f32[4,16], index: 1, kind: output, shape index: {}]  }
   0x1   :  { %v4_v0 = vld [vmem:[%s22_s0] ss:$0 sm:$0xff] }
   0x2   :  { %5 = vst [vmem:[%s23_s1] sm:$0xf] %v4_v0 }

// kernel: demucs_forward.23
= control target key start
LH: loop header
LB: loop body
LE: loop exit
PB: predicated region body
PF: predicated region fallthrough
CT: control target
= control target key end

     0   :  { %v181_v0 = vmov 0.0   ;;  %vm182_vm0 = vmmov 0   ;;  %s236_s1 = inlined_call_operand.vmem [shape: bf16[128,128], index: 1, kind: input, shape index: {}]   ;;  %s237_s0 = inlined_call_operand.vmem [shape: bf16[8,128], index: 0, kind: input, shape index: {}]   ;;  %s238_s2 = inlined_call_operand.vmem [shape: f32[1,128], index: 2, kind: input, shape index: {}]   ;;  %s239_s3 = inlined_call_operand.vmem [shape: f32[8,128], index: 3, kind: output, shape index: {}]  }
   0x1   :  { %151 = vmatprep.subr.bf16.mxu0 %v181_v0  ;;  %v173_v1 = vld [vmem:[%s236_s1 + $0x38] sm:$0xff]   ;;  %167 = vmatprep.mubr.msk.bf16.mxu0 %vm182_vm0, %v181_v0  ;;  %v174_v2 = vld [vmem:[%s236_s1 + $0x30] sm:$0xff]   ;;  %v175_v3 = vld [vmem:[%s236_s1 + $0x28] sm:$0xff]  }
   0x2   :  { %152 = vmatpush3.bf16.msra.mxu0 %v173_v1  ;;  %v176_v4 = vld [vmem:[%s236_s1 + $0x20] sm:$0xff]   ;;  %v177_v5 = vld [vmem:[%s236_s1 + $0x18] sm:$0xff]   ;;  %v178_v6 = vld [vmem:[%s236_s1 + $0x10] sm:$0xff]  }
   0x3   :  { %153 = vmatprep.subr.bf16.mxu0 %v181_v0  ;;  %v179_v7 = vld [vmem:[%s236_s1 + $0x8] sm:$0xff]   ;;  %v180_v8 = vld [vmem:[%s236_s1] sm:$0xff]  }
   0x4   :  { %v15_v9 = vld [vmem:[%s237_s0] sm:$0xf] }
   0x5   :  { %v133_v10 = vld [vmem:[%s238_s2] ss:$0 sm:$0xff] }
   0x6   :  { %154 = vmatpush3.bf16.msra.mxu0 %v174_v2 }
   0x7   :  { %155 = vmatprep.subr.bf16.mxu0 %v181_v0 }
   0xa   :  { %156 = vmatpush3.bf16.msra.mxu0 %v175_v3 }
   0xb   :  { %157 = vmatprep.subr.bf16.mxu0 %v181_v0 }
   0xe   :  { %158 = vmatpush3.bf16.msra.mxu0 %v176_v4 }
   0xf   :  { %159 = vmatprep.subr.bf16.mxu0 %v181_v0 }
  0x12   :  { %160 = vmatpush3.bf16.msra.mxu0 %v177_v5 }
  0x13   :  { %161 = vmatprep.subr.bf16.mxu0 %v181_v0 }
  0x16   :  { %162 = vmatpush3.bf16.msra.mxu0 %v178_v6 }
  0x17   :  { %163 = vmatprep.subr.bf16.mxu0 %v181_v0 }
  0x1a   :  { %164 = vmatpush3.bf16.msra.mxu0 %v179_v7 }
  0x1b   :  { %165 = vmatprep.subr.bf16.mxu0 %v181_v0 }
  0x1e   :  { %166 = vmatpush3.bf16.msra.mxu0 %v180_v8 }
  0x21   :  { %168 = vmatmul.mubr.bf16.vlgmr.msra.gmra.mxu0 %v15_v9 }
  0xe1   :  { %v121_v11 = vpop.f32.mrf.mxu0 }
  0xe2   :  { %v122_v12 = vadd.f32 %v133_v10, %v121_v11 }
  0xe3   :  { %v169_v13 = vpop.f32.mrf.mxu0 }
  0xe4   :  { %v127_v14 = vmax.f32 %v122_v12, 0.0 }
  0xe5   :  { %v124_v15 = vpop.f32.mrf.mxu0 }
  0xe6   :  { %128 = vst [vmem:[%s239_s3] sm:$0xff] %v127_v14 }
  0xe7   :  { %v170_v16 = vpop.f32.mrf.mxu0 }

// kernel: tile.83
= control target key start
LH: loop header
LB: loop body
LE: loop exit
PB: predicated region body
PF: predicated region fallthrough
CT: control target
= control target key end

     0   :  { %s22_s0 = inlined_call_operand.vmem [shape: f32[8], index: 0, kind: input, shape index: {}]   ;;  %s23_s1 = inlined_call_operand.vmem [shape: f32[4,8], index: 1, kind: output, shape index: {}]  }
   0x1   :  { %v4_v0 = vld [vmem:[%s22_s0] ss:$0 sm:$0xff] }
   0x2   :  { %5 = vst [vmem:[%s23_s1] sm:$0xf] %v4_v0 }

// kernel: tile.84
= control target key start
LH: loop header
LB: loop body
LE: loop exit
PB: predicated region body
PF: predicated region fallthrough
CT: control target
= control target key end

     0   :  { %vm8_vm0 = vcmask 64512   ;;  %s40_s8 = smov 8   ;;  %s41_s9 = smov 16   ;;  %vm14_vm1 = vcmask 261312   ;;  %vm20_vm2 = vcmask 195712   ;;  %vm26_vm3 = vcmask 130112   ;;  %s58_s0 = inlined_call_operand.vmem [shape: f32[4,8], index: 0, kind: input, shape index: {}]   ;;  %s59_s1 = inlined_call_operand.vmem [shape: f32[32], index: 1, kind: output, shape index: {}]  }
   0x1   :  { %v5_v0 = vld [vmem:[%s58_s0] sm:$0xf]  ;;  %s39_s0 = smov 24  }
   0x2   :  { %6 = vst [vmem:[#allocation1] sm:$0xf] %v5_v0 }
   0x9   :  { %v11_v1 = vld [vmem:[#allocation1 + $0x3] sm:$0x1]   ;;  %v23_v2 = vld [vmem:[#allocation1 + $0x1] sm:$0x1]   ;;  %v7_v3 = vld [vmem:[#allocation1] sm:$0x1]  }
   0xa   :  { %12 = vrot.lane.b32.xlu0 %v11_v1, %s39_s0  ;;  %24 = vrot.lane.b32.xlu1 %v23_v2, %s40_s8  ;;  %v17_v4 = vld [vmem:[#allocation1 + $0x2] sm:$0x1]   ;;  %9 = vst.msk [vmem:[#allocation0] sm:$0x1] %vm8_vm0, %v7_v3  }
   0xe   :  { %18 = vrot.lane.b32.xlu0 %v17_v4, %s41_s9 }
  0x7c   :  { %v13_v5 = vpop.permute.xlu0 %12   ;;  %v25_v6 = vpop.permute.xlu1 %24  }
  0x7d   :  { %15 = vst.msk [vmem:[#allocation0] sm:$0x1] %vm14_vm1, %v13_v5  }
  0x80   :  { %v19_v7 = vpop.permute.xlu0 %18  }
  0x81   :  { %21 = vst.msk [vmem:[#allocation0] sm:$0x1] %vm20_vm2, %v19_v7  }
  0x82   :  { %27 = vst.msk [vmem:[#allocation0] sm:$0x1] %vm26_vm3, %v25_v6  }
  0x89   :  { %v32_v8 = vld [vmem:[#allocation0] sm:$0x1] }
  0x8a   :  { %35 = vst [vmem:[%s59_s1] sm:$0x1] %v32_v8 }

// kernel: demucs_forward.25
= control target key start
LH: loop header
LB: loop body
LE: loop exit
PB: predicated region body
PF: predicated region fallthrough
CT: control target
= control target key end

     0   :  { %v134_v0 = vmov 0.0   ;;  %vm135_vm0 = vmmov 0   ;;  %vm55_vm1 = vcmask 523264   ;;  %s177_s1 = inlined_call_operand.vmem [shape: bf16[64,128], index: 1, kind: input, shape index: {}]   ;;  %s178_s0 = inlined_call_operand.vmem [shape: bf16[8,64], index: 0, kind: input, shape index: {}]   ;;  %s179_s2 = inlined_call_operand.vmem [shape: f32[1,128], index: 2, kind: input, shape index: {}]   ;;  %s180_s3 = inlined_call_operand.vmem [shape: f32[8,128], index: 3, kind: output, shape index: {}]  }
   0x1   :  { %116 = vmatprep.subr.bf16.mxu0 %v134_v0  ;;  %v130_v1 = vld [vmem:[%s177_s1 + $0x18] sm:$0xff]   ;;  %124 = vmatprep.mubr.msk.bf16.mxu0 %vm135_vm0, %v134_v0  ;;  %v131_v2 = vld [vmem:[%s177_s1 + $0x10] sm:$0xff]   ;;  %v132_v3 = vld [vmem:[%s177_s1 + $0x8] sm:$0xff]  }
   0x2   :  { %117 = vmatpush3.bf16.msra.mxu0 %v130_v1  ;;  %v133_v4 = vld [vmem:[%s177_s1] sm:$0xff]  }
   0x3   :  { %118 = vmatprep.subr.bf16.mxu0 %v134_v0  ;;  %v15_v5 = vld [vmem:[%s178_s0] sm:$0xf] }
   0x4   :  { %v105_v6 = vld [vmem:[%s179_s2] ss:$0 sm:$0xff] }
   0x6   :  { %119 = vmatpush3.bf16.msra.mxu0 %v131_v2 }
   0x7   :  { %120 = vmatprep.subr.bf16.mxu0 %v134_v0 }
   0xa   :  { %121 = vmatpush3.bf16.msra.mxu0 %v132_v3 }
   0xb   :  { %122 = vmatprep.subr.bf16.mxu0 %v134_v0 }
   0xe   :  { %123 = vmatpush3.bf16.msra.mxu0 %v133_v4 }
  0x11   :  { %125 = vmatmul.mubr.msk.bf16.vlgmr.msra.gmra.mxu0 %vm55_vm1, %v15_v5 }
  0xd1   :  { %v93_v7 = vpop.f32.mrf.mxu0 }
  0xd2   :  { %v94_v8 = vadd.f32 %v105_v6, %v93_v7 }
  0xd3   :  { %v126_v9 = vpop.f32.mrf.mxu0 }
  0xd4   :  { %v99_v10 = vmax.f32 %v94_v8, 0.0 }
  0xd5   :  { %v96_v11 = vpop.f32.mrf.mxu0 }
  0xd6   :  { %100 = vst [vmem:[%s180_s3] sm:$0xff] %v99_v10 }
  0xd7   :  { %v127_v12 = vpop.f32.mrf.mxu0 }

// kernel: demucs_forward.27
= control target key start
LH: loop header
LB: loop body
LE: loop exit
PB: predicated region body
PF: predicated region fallthrough
CT: control target
= control target key end

     0   :  { %vm49_vm0 = vcmask 261120   ;;  %s181_s1 = inlined_call_operand.vmem [shape: bf16[32,128], index: 1, kind: input, shape index: {}]   ;;  %s182_s0 = inlined_call_operand.vmem [shape: bf16[24,32], index: 0, kind: input, shape index: {}]   ;;  %s183_s2 = inlined_call_operand.vmem [shape: f32[1,128], index: 2, kind: input, shape index: {}]   ;;  %s184_s3 = inlined_call_operand.vmem [shape: f32[24,128], index: 3, kind: output, shape index: {}]  }
   0x1   :  { %v133_v0 = vld [vmem:[%s181_s1 + $0x8] sm:$0xff]   ;;  %v134_v1 = vld [vmem:[%s181_s1] sm:$0xff]  }
   0x2   :  { %125 = vmatprep.subr.bf16.mxu0 %v133_v0  ;;  %v135_v2 = vld [vmem:[%s182_s0] sm:$0xff]   ;;  %v136_v3 = vld [vmem:[%s182_s0 + $0x8] ss:$0 sps:$4 sm:$0xff]  }
   0x3   :  { %126 = vmatpush3.bf16.msra.mxu0 %v133_v0  ;;  %129 = vmatprep.mubr.msk.bf16.mxu0 %vm49_vm0, %v135_v2  ;;  %v114_v4 = vld [vmem:[%s183_s2] ss:$0 sm:$0xff] }
   0x4   :  { %127 = vmatprep.subr.bf16.mxu0 %v134_v1 }
   0x7   :  { %128 = vmatpush3.bf16.msra.mxu0 %v134_v1 }
   0xa   :  { %130 = vmatmul.mubr.msk.bf16.vlgmr.msra.gmra.mxu0 %vm49_vm0, %v136_v3 }
  0xca   :  { %v131_v5 = vpop.f32.mrf.mxu0 }
  0xcb   :  { %v99_v6 = vadd.f32 %v131_v5, %v114_v4 }
  0xcc   :  { %v90_v7 = vpop.f32.mrf.mxu0 }
  0xcd   :  { %v106_v8 = vmax.f32 %v99_v6, 0.0  ;;  %v91_v9 = vadd.f32 %v114_v4, %v90_v7 }
  0xce   :  { %v132_v10 = vpop.f32.mrf.mxu0 }
  0xcf   :  { %109 = vst [vmem:[%s184_s3 + $0x10] sm:$0xff] %v106_v8  ;;  %v104_v11 = vmax.f32 %v91_v9, 0.0 }
  0xd0   :  { %v93_v12 = vpop.f32.mrf.mxu0 }
  0xd1   :  { %107 = vst [vmem:[%s184_s3] sm:$0xff] %v104_v11  ;;  %v94_v13 = vadd.f32 %v114_v4, %v93_v12 }
  0xd3   :  { %v105_v14 = vmax.f32 %v94_v13, 0.0 }
  0xd5   :  { %108 = vst [vmem:[%s184_s3 + $0x8] sm:$0xff] %v105_v14 }

// kernel: demucs_forward.29
= control target key start
LH: loop header
LB: loop body
LE: loop exit
PB: predicated region body
PF: predicated region fallthrough
CT: control target
= control target key end

     0   :  { %vm69_vm0 = vcmask 130048   ;;  %s304_s1 = inlined_call_operand.vmem [shape: bf16[16,128], index: 1, kind: input, shape index: {}]   ;;  %s305_s0 = inlined_call_operand.vmem [shape: bf16[88,16], index: 0, kind: input, shape index: {}]   ;;  %s306_s2 = inlined_call_operand.vmem [shape: f32[1,128], index: 2, kind: input, shape index: {}]   ;;  %s307_s3 = inlined_call_operand.vmem [shape: f32[88,128], index: 3, kind: output, shape index: {}]  }
   0x1   :  { %v220_v0 = vld [vmem:[%s304_s1] sm:$0xff]   ;;  %v221_v1 = vld [vmem:[%s305_s0 + $0x10] sm:$0xff]   ;;  %v222_v2 = vld [vmem:[%s305_s0 + $0x18] sm:$0xff]  }
   0x2   :  { %218 = vmatprep.subr.bf16.mxu1 %v220_v0  ;;  %204 = vmatprep.subr.bf16.mxu0 %v220_v0  ;;  %v223_v3 = vld [vmem:[%s305_s0] sm:$0xff]   ;;  %v224_v4 = vld [vmem:[%s305_s0 + $0x8] sm:$0xff]  }
   0x3   :  { %219 = vmatpush3.bf16.msra.mxu1 %v220_v0  ;;  %205 = vmatpush3.bf16.msra.mxu0 %v220_v0  ;;  %v225_v5 = vld [vmem:[%s305_s0 + $0x20] sm:$0xff]   ;;  %v226_v6 = vld [vmem:[%s305_s0 + $0x28] ss:$0 sps:$4 sm:$0xff]  }
   0x4   :  { %210 = vmatprep.mubr.msk.bf16.mxu1 %vm69_vm0, %v221_v1  ;;  %206 = vmatprep.mubr.msk.bf16.mxu0 %vm69_vm0, %v223_v3  ;;  %v183_v7 = vld [vmem:[%s306_s2] ss:$0 sm:$0xff] }
   0x6   :  { %211 = vmatmul.mubr.msk.bf16.vlgmr.msra.gmra.mxu1 %vm69_vm0, %v222_v2  ;;  %207 = vmatmul.mubr.msk.bf16.vlgmr.msra.gmra.mxu0 %vm69_vm0, %v224_v4 }
   0x7   :  { %214 = vmatprep.mubr.msk.bf16.mxu1 %vm69_vm0, %v225_v5 }
   0xe   :  { %215 = vmatmul.mubr.msk.bf16.gmra.mxu1 %vm69_vm0, %v226_v6 }
  0xc6   :  { %v212_v8 = vpop.f32.mrf.mxu1  ;;  %v208_v9 = vpop.f32.mrf.mxu0 }
  0xc7   :  { %v147_v10 = vadd.f32 %v212_v8, %v183_v7  ;;  %v131_v11 = vadd.f32 %v208_v9, %v183_v7 }
  0xc8   :  { %v138_v12 = vpop.f32.mrf.mxu1  ;;  %v122_v13 = vpop.f32.mrf.mxu0 }
  0xc9   :  { %174 = vst [vmem:[%s307_s3 + $0x30] sm:$0xff] %v147_v10  ;;  %170 = vst [vmem:[%s307_s3 + $0x10] sm:$0xff] %v131_v11  ;;  %v139_v14 = vadd.f32 %v183_v7, %v138_v12  ;;  %v123_v15 = vadd.f32 %v183_v7, %v122_v13 }
  0xca   :  { %v213_v16 = vpop.f32.mrf.mxu1  ;;  %v209_v17 = vpop.f32.mrf.mxu0 }
  0xcb   :  { %172 = vst [vmem:[%s307_s3 + $0x20] sm:$0xff] %v139_v14  ;;  %168 = vst [vmem:[%s307_s3] sm:$0xff] %v123_v15  ;;  %v150_v18 = vadd.f32 %v213_v16, %v183_v7  ;;  %v134_v19 = vadd.f32 %v209_v17, %v183_v7 }
  0xcc   :  { %v141_v20 = vpop.f32.mrf.mxu1  ;;  %v125_v21 = vpop.f32.mrf.mxu0 }
  0xcd   :  { %175 = vst [vmem:[%s307_s3 + $0x38] sm:$0xff] %v150_v18  ;;  %171 = vst [vmem:[%s307_s3 + $0x18] sm:$0xff] %v134_v19  ;;  %v142_v22 = vadd.f32 %v183_v7, %v141_v20  ;;  %v126_v23 = vadd.f32 %v183_v7, %v125_v21 }
  0xce   :  { %v216_v24 = vpop.f32.mrf.mxu1 }
  0xcf   :  { %173 = vst [vmem:[%s307_s3 + $0x28] sm:$0xff] %v142_v22  ;;  %169 = vst [vmem:[%s307_s3 + $0x8] sm:$0xff] %v126_v23  ;;  %v163_v25 = vadd.f32 %v216_v24, %v183_v7 }
  0xd0   :  { %v154_v26 = vpop.f32.mrf.mxu1 }
  0xd1   :  { %178 = vst [vmem:[%s307_s3 + $0x50] sm:$0xff] %v163_v25  ;;  %v155_v27 = vadd.f32 %v183_v7, %v154_v26 }
  0xd2   :  { %v217_v28 = vpop.f32.mrf.mxu1 }
  0xd3   :  { %176 = vst [vmem:[%s307_s3 + $0x40] sm:$0xff] %v155_v27 }
  0xd4   :  { %v157_v29 = vpop.f32.mrf.mxu1 }
  0xd5   :  { %v158_v30 = vadd.f32 %v183_v7, %v157_v29 }
  0xd7   :  { %177 = vst [vmem:[%s307_s3 + $0x48] sm:$0xff] %v158_v30 }

</bundles_post_ra>
